<compile_context>
chip_gen: v7x
topology: tpu7x:2x2x1
jax: 0.10.0
libtpu: 0.0.40
codegen_flags: <defaults>
</compile_context>

<pallas_src>
import functools

import numpy as np
import jax
import jax.numpy as jnp
from jax import lax
from jax.experimental import pallas as pl
from jax.experimental.pallas import tpu as pltpu

_MIN_PALLAS_ELEMS = 4096              # below this a fused XLA op beats a pallas_call
_TARGET_BLOCK_BYTES = 2 * 1024 * 1024  # per-stream block size target
_MAX_LANE_CHUNKS = 8                  # cap on the unrolled in-kernel chunk loop
_VMEM_LIMIT_BYTES = 48 * 1024 * 1024  # safe on v5e/v6e, <= v7x's 64 MiB physical


def _reference(inputs, target, code_weights, weights):
    """Pure-JAX reference mirroring the PyTorch forward (also the tiny-shape path)."""
    target = jnp.where(jnp.isnan(target), inputs, target)
    diff = inputs - target
    if code_weights is not None:
        diff = diff * code_weights.reshape(1, 1, -1).astype(diff.dtype)
    loss = jnp.abs(diff)
    if weights is not None:
        loss = loss * weights[..., None].astype(loss.dtype)
    return loss


def _wl1_kernel(*refs, has_cw, has_w, code_size, lane_chunks, anchors_per_row):
    it = iter(refs)
    x_ref = next(it)
    t_ref = next(it)
    cw_ref = next(it) if has_cw else None
    w_ref = next(it) if has_w else None
    e_ref = next(it) if has_w else None
    out_ref = next(it)

    x = x_ref[...]
    t = t_ref[...]
    t = jnp.where(jnp.isnan(t), x, t)
    diff = x - t
    if has_cw:
        diff = diff * cw_ref[...]          # (1, TN) row, broadcast over sublanes
    loss = jnp.abs(diff)

    if not has_w:
        out_ref[...] = loss.astype(out_ref.dtype)
        return

    C = code_size
    TB, TN = loss.shape
    TA = TN // C                           # anchors covered by this lane tile
    j = pl.program_id(1)

    # Zero the ragged-edge anchor weights: the boundary block's out-of-bounds
    # lanes hold undefined VMEM data, and a NaN/Inf there would poison the
    # whole expansion matmul's sum.  In-bounds lanes are exact (0/1 one-hot).
    lane = lax.broadcasted_iota(jnp.int32, (TB, TA), 1)
    valid = (j * TA + lane) < anchors_per_row
    w = jnp.where(valid, w_ref[...], 0.0).astype(jnp.float32)
    e = e_ref[...]                         # (128, 128*C) one-hot expansion matrix

    # Expand (TB, 128) anchor weights -> (TB, 128*C) lane weights on the idle
    # MXU, one 128-anchor chunk at a time; store lane-dense output chunks.
    for kk in range(lane_chunks):          # static unroll, lane_chunks <= 8
        w_k = w[:, kk * 128:(kk + 1) * 128]
        w_exp = jnp.dot(w_k, e, preferred_element_type=jnp.float32)
        sl = slice(kk * 128 * C, (kk + 1) * 128 * C)
        out_ref[:, sl] = (loss[:, sl] * w_exp).astype(out_ref.dtype)


def _pick_fold(B, A, min_rows=8, min_anchors_per_row=128):
    """Smallest G dividing A with B*G >= 8 rows and >= 128 anchors left per row."""
    if B >= min_rows:
        return 1
    for g in range(1, min(A, 64) + 1):
        if A % g == 0 and B * g >= min_rows and (A // g) >= min_anchors_per_row:
            return g
    return 1


def _choose_tiles(rows, cols, lane_unit, itemsize):
    # Sublane tile.
    if rows <= 8:
        tb = rows
        tb_vmem_rows = 8                   # (8,128) VMEM tiling pads the sublanes
    else:
        tb = min((rows // 8) * 8, 256)
        tb_vmem_rows = tb
    # TODO(synk): for bf16 inputs the native sublane tile is 16; tb stays a
    # multiple of 8 here which is correct but slightly sub-optimal.
    n_units = max(1, cols // lane_unit)
    k = max(1, _TARGET_BLOCK_BYTES // (tb_vmem_rows * lane_unit * itemsize))
    k = min(k, _MAX_LANE_CHUNKS, n_units)
    # v7x has 2 TensorCores: when the sublane grid cannot shard, keep >= 2 lane blocks.
    if rows <= tb and n_units >= 2:
        k = min(k, max(1, n_units // 2))
    return tb, k * lane_unit


@functools.partial(jax.jit, static_argnames=("has_cw", "has_w"))
def _weighted_l1_forward(inputs, target, code_weights, weights, *, has_cw, has_w):
    B, A, C = inputs.shape
    dtype = inputs.dtype
    itemsize = jnp.dtype(dtype).itemsize
    numel = B * A * C

    if numel < _MIN_PALLAS_ELEMS:
        # pallas_call launch + a single grid step is pure overhead at this size.
        return _reference(inputs, target, code_weights if has_cw else None,
                          weights if has_w else None)

    needs_chunk = has_cw or has_w
    lane_unit = (128 * C) if needs_chunk else 128

    # Fold anchors into the sublane axis when B is tiny (metadata-only reshape).
    G = _pick_fold(B, A)
    R, AR = B * G, A // G
    NC = AR * C

    if NC < lane_unit:
        # Too narrow for an aligned lane tile; fused XLA is fine at this size.
        return _reference(inputs, target, code_weights if has_cw else None,
                          weights if has_w else None)

    # Free reshapes (row-major contiguity) — no HBM copies.
    x2 = inputs.reshape(R, NC)
    t2 = target.reshape(R, NC)

    TB, TN = _choose_tiles(R, NC, lane_unit, itemsize)
    grid = (pl.cdiv(R, TB), pl.cdiv(NC, TN))

    tile_spec = pl.BlockSpec((TB, TN), lambda i, j: (i, j))
    operands = [x2, t2]
    in_specs = [tile_spec, tile_spec]
    bytes_accessed = 3 * numel * itemsize

    if has_cw:
        # One lane-tile worth of the repeating code-weight pattern; constant
        # block index => VMEM-resident, DMA'd once for the whole kernel.
        cw_row = jnp.tile(code_weights.astype(dtype), TN // C).reshape(1, TN)
        operands.append(cw_row)
        in_specs.append(pl.BlockSpec((1, TN), lambda i, j: (0, 0)))
        bytes_accessed += TN * itemsize

    lane_chunks = TN // (128 * C) if has_w else 0
    if has_w:
        w2 = weights.astype(jnp.float32).reshape(R, AR)   # raw (B, A), just re-viewed
        operands.append(w2)
        in_specs.append(pl.BlockSpec((TB, TN // C), lambda i, j: (i, j)))
        # One-hot expansion matrix: anchor a -> lanes [a*C, (a+1)*C); VMEM-resident.
        expand = jnp.repeat(jnp.eye(128, dtype=jnp.float32), C, axis=1)
        operands.append(expand)
        in_specs.append(pl.BlockSpec((128, 128 * C), lambda i, j: (0, 0)))
        bytes_accessed += R * AR * 4 + 128 * 128 * C * 4

    kernel = functools.partial(
        _wl1_kernel, has_cw=has_cw, has_w=has_w, code_size=C,
        lane_chunks=lane_chunks, anchors_per_row=AR)

    out = pl.pallas_call(
        kernel,
        out_shape=jax.ShapeDtypeStruct((R, NC), dtype),
        grid=grid,
        in_specs=in_specs,
        out_specs=tile_spec,
        compiler_params=pltpu.CompilerParams(
            dimension_semantics=("parallel", "parallel"),
            vmem_limit_bytes=_VMEM_LIMIT_BYTES,
        ),
        cost_estimate=pl.CostEstimate(
            flops=6 * numel, transcendentals=0, bytes_accessed=bytes_accessed),
    )(*operands)

    return out.reshape(B, A, C)


class WeightedL1Loss:
    """JAX/Pallas port of the PyTorch WeightedL1Loss forward pass."""

    def __init__(self, code_weights=None):
        if code_weights is not None:
            self.code_weights = jnp.asarray(np.array(code_weights, dtype=np.float32))
        else:
            self.code_weights = None

    def __call__(self, inputs, target, weights=None):
        if weights is not None:
            assert weights.shape[0] == inputs.shape[0]
            assert weights.shape[1] == inputs.shape[1]
        return _weighted_l1_forward(
            inputs, target, self.code_weights, weights,
            has_cw=self.code_weights is not None, has_w=weights is not None)


def _make_case(key, B, A, C, nan_frac=0.1):
    k1, k2, k3, k4 = jax.random.split(key, 4)
    inputs = jax.random.normal(k1, (B, A, C), dtype=jnp.float32)
    target = jax.random.normal(k2, (B, A, C), dtype=jnp.float32)
    target = jnp.where(jax.random.bernoulli(k3, nan_frac, (B, A, C)), jnp.nan, target)
    weights = jax.random.uniform(k4, (B, A), dtype=jnp.float32)
    return inputs, target, weights


def _check(got, want, name):
    np.testing.assert_allclose(np.asarray(got), np.asarray(want),
                               rtol=1e-6, atol=1e-6, err_msg=name)


if __name__ == "__main__":
    root = jax.random.PRNGKey(0)
    keys = jax.random.split(root, 8)

    cw7 = [1.0, 2.0, 0.5, 1.5, 1.0, 0.75, 1.25]
    cw7_arr = jnp.asarray(np.array(cw7, dtype=np.float32))
    mod7 = WeightedL1Loss(code_weights=cw7)
    mod_plain = WeightedL1Loss(code_weights=None)

    # 1) code_weights + per-anchor weights (Pallas path; folded sublanes, 2 lane blocks).
    x, t, w = _make_case(keys[0], 2, 1024, 7)
    out = jax.block_until_ready(mod7(x, t, w))
    _check(out, _reference(x, t, cw7_arr, w), "cw+w B=2 A=1024 C=7")

    # 2) code_weights only (Pallas path).
    out = jax.block_until_ready(mod7(x, t, None))
    _check(out, _reference(x, t, cw7_arr, None), "cw B=2 A=1024 C=7")

    # 3) ragged sublane AND lane edges, with weights (Pallas path, masked matmul).
    x, t, w = _make_case(keys[1], 3, 1000, 7)
    out = jax.block_until_ready(mod7(x, t, w))
    _check(out, _reference(x, t, cw7_arr, w), "cw+w B=3 A=1000 C=7 ragged")

    # 4) weights only, different code size (Pallas path).
    x, t, w = _make_case(keys[2], 16, 400, 9)
    out = jax.block_until_ready(mod_plain(x, t, w))
    _check(out, _reference(x, t, None, w), "w B=16 A=400 C=9")

    # 5) neither code_weights nor weights (Pallas path).
    x, t, _ = _make_case(keys[3], 4, 512, 7)
    out = jax.block_until_ready(mod_plain(x, t, None))
    _check(out, _reference(x, t, None, None), "plain B=4 A=512 C=7")

    # 6) tiny problem -> fused-XLA fast path (original demo shape).
    x, t, w = _make_case(keys[4], 2, 64, 7)
    out = jax.block_until_ready(mod7(x, t, w))
    _check(out, _reference(x, t, cw7_arr, w), "small fast path B=2 A=64 C=7")

    print("KERNEL_OK")
</pallas_src>

<mosaic_0001>
module attributes {stable_mosaic.version = 11 : i64} {
  func.func @_wl1_kernel(%arg0: i32, %arg1: i32, %arg2: memref<8x896xf32, #tpu.memory_space<vmem>>, %arg3: memref<8x896xf32, #tpu.memory_space<vmem>>, %arg4: memref<1x896xf32, #tpu.memory_space<vmem>>, %arg5: memref<8x128xf32, #tpu.memory_space<vmem>>, %arg6: memref<128x896xf32, #tpu.memory_space<vmem>>, %arg7: memref<8x896xf32, #tpu.memory_space<vmem>>) attributes {dimension_semantics = [#tpu.dimension_semantics<parallel>, #tpu.dimension_semantics<parallel>], iteration_bounds = array<i64: 1, 2>, scalar_prefetch = 0 : i64, scratch_operands = 0 : i64, tpu.core_type = #tpu.core_type<tc>, window_params = [{transform_indices = @transform_0, window_bounds = array<i64: 8, 896>}, {transform_indices = @transform_1, window_bounds = array<i64: 8, 896>}, {pipeline_mode = #tpu.pipeline_mode<synchronous>, transform_indices = @transform_2, window_bounds = array<i64: 1, 896>}, {transform_indices = @transform_3, window_bounds = array<i64: 8, 128>}, {pipeline_mode = #tpu.pipeline_mode<synchronous>, transform_indices = @transform_4, window_bounds = array<i64: 128, 896>}, {transform_indices = @transform_5, window_bounds = array<i64: 8, 896>}]} {
    %c0 = arith.constant 0 : index
    %c0_0 = arith.constant 0 : index
    %0 = vector.load %arg2[%c0, %c0_0] : memref<8x896xf32, #tpu.memory_space<vmem>>, vector<8x896xf32>
    %c0_1 = arith.constant 0 : index
    %c0_2 = arith.constant 0 : index
    %1 = vector.load %arg3[%c0_1, %c0_2] : memref<8x896xf32, #tpu.memory_space<vmem>>, vector<8x896xf32>
    %2 = arith.cmpf one, %1, %1 : vector<8x896xf32>
    %3 = arith.select %2, %0, %1 : vector<8x896xi1>, vector<8x896xf32>
    %4 = arith.subf %0, %3 : vector<8x896xf32>
    %c0_3 = arith.constant 0 : index
    %c0_4 = arith.constant 0 : index
    %5 = vector.load %arg4[%c0_3, %c0_4] : memref<1x896xf32, #tpu.memory_space<vmem>>, vector<1x896xf32>
    %6 = vector.broadcast %5 : vector<1x896xf32> to vector<8x896xf32>
    %7 = arith.mulf %4, %6 : vector<8x896xf32>
    %8 = math.absf %7 : vector<8x896xf32>
    %9 = tpu.iota {dimensions = array<i32: 1>} : vector<8x128xi32>
    %c128_i32 = arith.constant 128 : i32
    %10 = arith.muli %arg1, %c128_i32 : i32
    %11 = vector.broadcast %10 : i32 to vector<8x128xi32>
    %12 = arith.addi %11, %9 : vector<8x128xi32>
    %c256_i32 = arith.constant 256 : i32
    %13 = vector.broadcast %c256_i32 : i32 to vector<8x128xi32>
    %14 = arith.cmpi slt, %12, %13 : vector<8x128xi32>
    %c0_5 = arith.constant 0 : index
    %c0_6 = arith.constant 0 : index
    %15 = vector.load %arg5[%c0_5, %c0_6] : memref<8x128xf32, #tpu.memory_space<vmem>>, vector<8x128xf32>
    %cst = arith.constant 0.000000e+00 : f32
    %16 = vector.broadcast %cst : f32 to vector<8x128xf32>
    %17 = arith.select %14, %15, %16 : vector<8x128xi1>, vector<8x128xf32>
    %c0_7 = arith.constant 0 : index
    %c0_8 = arith.constant 0 : index
    %18 = vector.load %arg6[%c0_7, %c0_8] : memref<128x896xf32, #tpu.memory_space<vmem>>, vector<128x896xf32>
    %cst_9 = arith.constant dense<0.000000e+00> : vector<8x896xf32>
    %19 = tpu.matmul %17, %18, %cst_9 {dimension_numbers = #tpu.dot_dimension_numbers<[1], [0], [0], [1], [0, 0, 1, 1], [], []>} : vector<8x128xf32>, vector<128x896xf32>, vector<8x896xf32> -> vector<8x896xf32>
    %20 = arith.mulf %8, %19 : vector<8x896xf32>
    %c0_10 = arith.constant 0 : index
    %c0_11 = arith.constant 0 : index
    %21 = vector.load %arg7[%c0_10, %c0_11] : memref<8x896xf32, #tpu.memory_space<vmem>>, vector<8x896xf32>
    tpu.vector_store %arg7[%c0_10, %c0_11], %20 {strides = array<i32>} : memref<8x896xf32, #tpu.memory_space<vmem>>, vector<8x896xf32>,
    return
  }
  func.func @transform_0(%arg0: i32, %arg1: i32) -> (i32, i32) {
    %c0_i32 = arith.constant 0 : i32
    return %arg0, %arg1 : i32, i32
  }
  func.func @transform_1(%arg0: i32, %arg1: i32) -> (i32, i32) {
    %c0_i32 = arith.constant 0 : i32
    return %arg0, %arg1 : i32, i32
  }
  func.func @transform_2(%arg0: i32, %arg1: i32) -> (i32, i32) {
    %c0_i32 = arith.constant 0 : i32
    %c0_i32_0 = arith.constant 0 : i32
    %c0_i32_1 = arith.constant 0 : i32
    return %c0_i32, %c0_i32_0 : i32, i32
  }
  func.func @transform_3(%arg0: i32, %arg1: i32) -> (i32, i32) {
    %c0_i32 = arith.constant 0 : i32
    return %arg0, %arg1 : i32, i32
  }
  func.func @transform_4(%arg0: i32, %arg1: i32) -> (i32, i32) {
    %c0_i32 = arith.constant 0 : i32
    %c0_i32_0 = arith.constant 0 : i32
    %c0_i32_1 = arith.constant 0 : i32
    return %c0_i32, %c0_i32_0 : i32, i32
  }
  func.func @transform_5(%arg0: i32, %arg1: i32) -> (i32, i32) {
    %c0_i32 = arith.constant 0 : i32
    return %arg0, %arg1 : i32, i32
  }
}

</mosaic_0001>

<bundles_post_ra>
// kernel: tile.8
= control target key start
LH: loop header
LB: loop body
LE: loop exit
PB: predicated region body
PF: predicated region fallthrough
CT: control target
= control target key end

     0   :  { %s112_s0 = inlined_call_operand.vmem [shape: f32[7], index: 0, kind: input, shape index: {}]   ;;  %s113_s1 = inlined_call_operand.vmem [shape: f32[128,7], index: 1, kind: output, shape index: {}]  }
   0x1   :  { %v4_v0 = vld [vmem:[%s112_s0] ss:$0 sm:$0xff] }
   0x2   :  { %5 = vst [vmem:[%s113_s1] sm:$0xff] %v4_v0  ;;  %36 = vst [vmem:[%s113_s1 + $0x8] sm:$0xff] %v4_v0 }
   0x3   :  { %37 = vst [vmem:[%s113_s1 + $0x10] sm:$0xff] %v4_v0  ;;  %38 = vst [vmem:[%s113_s1 + $0x18] sm:$0xff] %v4_v0 }
   0x4   :  { %39 = vst [vmem:[%s113_s1 + $0x20] sm:$0xff] %v4_v0  ;;  %40 = vst [vmem:[%s113_s1 + $0x28] sm:$0xff] %v4_v0 }
   0x5   :  { %41 = vst [vmem:[%s113_s1 + $0x30] sm:$0xff] %v4_v0  ;;  %42 = vst [vmem:[%s113_s1 + $0x38] sm:$0xff] %v4_v0 }
   0x6   :  { %43 = vst [vmem:[%s113_s1 + $0x40] sm:$0xff] %v4_v0  ;;  %44 = vst [vmem:[%s113_s1 + $0x48] sm:$0xff] %v4_v0 }
   0x7   :  { %45 = vst [vmem:[%s113_s1 + $0x50] sm:$0xff] %v4_v0  ;;  %46 = vst [vmem:[%s113_s1 + $0x58] sm:$0xff] %v4_v0 }
   0x8   :  { %47 = vst [vmem:[%s113_s1 + $0x60] sm:$0xff] %v4_v0  ;;  %48 = vst [vmem:[%s113_s1 + $0x68] sm:$0xff] %v4_v0 }
   0x9   :  { %49 = vst [vmem:[%s113_s1 + $0x70] sm:$0xff] %v4_v0  ;;  %50 = vst [vmem:[%s113_s1 + $0x78] sm:$0xff] %v4_v0 }

// kernel: tile.9
= control target key start
LH: loop header
LB: loop body
LE: loop exit
PB: predicated region body
PF: predicated region fallthrough
CT: control target
= control target key end

     0   :  { %vm9_vm0 = vcmask 7168   ;;  %vm36_vm1 = vcmask 23552   ;;  %s1230_s14 = smov 127   ;;  %vm23_vm2 = vcmask 15360   ;;  %s1231_s19 = smov 125   ;;  %vm40_vm3 = vcmask 31744   ;;  %s1802_s0 = inlined_call_operand.vmem [shape: f32[128,7], index: 0, kind: input, shape index: {}]   ;;  %s1803_s1 = inlined_call_operand.vmem [shape: f32[1,896], index: 1, kind: output, shape index: {}]  }
   0x1   :  { %v964_v0 = vld [vmem:[%s1802_s0 + $0x49] sm:$0x1]   ;;  %v968_v3 = vld [vmem:[%s1802_s0 + $0x5b] sm:$0x1]   ;;  %v966_v6 = vld [vmem:[%s1802_s0 + $0x12] sm:$0x1]  }
   0x2   :  { %v965_v1 = vld [vmem:[%s1802_s0 + $0x49] sm:$0x1]   ;;  %v969_v4 = vld [vmem:[%s1802_s0 + $0x5b] sm:$0x1]   ;;  %v967_v7 = vld [vmem:[%s1802_s0 + $0x12] sm:$0x1]  }
   0x3   :  { %v10_v2 = vsel %vm9_vm0, %v965_v1, %v964_v0  ;;  %v37_v5 = vsel %vm36_vm1, %v969_v4, %v968_v3  ;;  %v24_v8 = vsel %vm23_vm2, %v967_v7, %v966_v6  ;;  %v970_v9 = vld [vmem:[%s1802_s0 + $0x24] sm:$0x1]   ;;  %vm27_vm4 = vcmask 39936   ;;  %v972_v12 = vld [vmem:[%s1802_s0 + $0x6d] sm:$0x1]   ;;  %s1232_s3 = smov 126  }
   0x4   :  { %11 = vrot.lane.b32.xlu0 %v10_v2, %s1230_s14  ;;  %38 = vrot.lane.b32.xlu1 %v37_v5, %s1231_s19  ;;  %v971_v10 = vld [vmem:[%s1802_s0 + $0x24] sm:$0x1]   ;;  %v973_v13 = vld [vmem:[%s1802_s0 + $0x6d] sm:$0x1]   ;;  %vm13_vm5 = vcmask 48128   ;;  %s1233_s4 = smov 124  }
   0x5   :  { %v51_v11 = vsel %vm40_vm3, %v971_v10, %v970_v9  ;;  %v974_v14 = vld [vmem:[%s1802_s0 + $0x36] sm:$0x1]   ;;  %v65_v16 = vsel %vm27_vm4, %v973_v13, %v972_v12  ;;  %s1234_s5 = smov 123   ;;  %s1235_s6 = smov 122   ;;  %v976_v18 = vld [vmem:[%s1802_s0 + $0x7f] sm:$0x1]  }
   0x6   :  { %v975_v15 = vld [vmem:[%s1802_s0 + $0x36] sm:$0x1]   ;;  %v977_v19 = vld [vmem:[%s1802_s0 + $0x48] sm:$0x1]   ;;  %s1236_s11 = smov 121   ;;  %s1237_s12 = smov 120  }
   0x7   :  { %v79_v17 = vsel %vm13_vm5, %v975_v15, %v974_v14  ;;  %v978_v20 = vld [vmem:[%s1802_s0 + $0x11] sm:$0x1]   ;;  %v979_v21 = vld [vmem:[%s1802_s0 + $0x5a] sm:$0x1]   ;;  %s1238_s17 = smov 119   ;;  %s1239_s18 = smov 118  }
   0x8   :  { %25 = vrot.lane.b32.xlu0 %v24_v8, %s1232_s3  ;;  %52 = vrot.lane.b32.xlu1 %v51_v11, %s1233_s4  ;;  %v980_v22 = vld [vmem:[%s1802_s0 + $0x23] sm:$0x1]   ;;  %v981_v23 = vld [vmem:[%s1802_s0 + $0x6c] sm:$0x1]   ;;  %s1240_s23 = smov 117   ;;  %s1241_s24 = smov 116  }
   0x9   :  { %v982_v24 = vld [vmem:[%s1802_s0 + $0x35] sm:$0x1]   ;;  %v983_v25 = vld [vmem:[%s1802_s0 + $0x7e] sm:$0x1]   ;;  %s1242_s29 = smov 115   ;;  %s1243_s30 = smov 114  }
   0xa   :  { %v984_v26 = vld [vmem:[%s1802_s0 + $0x47] sm:$0x1]   ;;  %v985_v27 = vld [vmem:[%s1802_s0 + $0x10] sm:$0x1]   ;;  %s1245_s7 = smov 112   ;;  %vm3_vm6 = vcmask 56320  }
   0xb   :  { %v986_v28 = vld [vmem:[%s1802_s0 + $0x59] sm:$0x1]   ;;  %v987_v29 = vld [vmem:[%s1802_s0 + $0x22] sm:$0x1]   ;;  %v2_v30 = vld [vmem:[%s1802_s0] sm:$0x1]  }
   0xc   :  { %66 = vrot.lane.b32.xlu0 %v65_v16, %s1234_s5  ;;  %80 = vrot.lane.b32.xlu1 %v79_v17, %s1235_s6  ;;  %s1244_s6 = smov 113   ;;  %s1246_s14 = smov 111   ;;  %4 = vst.msk [vmem:[#allocation0] sm:$0x1] %vm3_vm6, %v2_v30   ;;  %v988_v31 = vld [vmem:[%s1802_s0 + $0x6b] sm:$0x1]  }
   0xd   :  { %s1247_s15 = smov 110   ;;  %v989_v32 = vld [vmem:[%s1802_s0 + $0x34] sm:$0x1]   ;;  %s1248_s20 = smov 109   ;;  %v990_v33 = vld [vmem:[%s1802_s0 + $0x7d] sm:$0x1]  }
   0xe   :  { %s1249_s21 = smov 108   ;;  %v991_v34 = vld [vmem:[%s1802_s0 + $0x46] sm:$0x1]   ;;  %s1250_s26 = smov 107   ;;  %v992_v35 = vld [vmem:[%s1802_s0 + $0xf] sm:$0x1]  }
   0xf   :  { %s1251_s27 = smov 106   ;;  %v993_v36 = vld [vmem:[%s1802_s0 + $0x58] sm:$0x1]   ;;  %s1252_s3 = smov 105   ;;  %v994_v37 = vld [vmem:[%s1802_s0 + $0x21] sm:$0x1]  }
  0x10   :  { %90 = vrot.lane.b32.xlu0 %v976_v18, %s1236_s11  ;;  %97 = vrot.lane.b32.xlu1 %v977_v19, %s1237_s12  ;;  %s1253_s4 = smov 104   ;;  %v995_v38 = vld [vmem:[%s1802_s0 + $0x6a] sm:$0x1]   ;;  %s1254_s9 = smov 103   ;;  %v996_v39 = vld [vmem:[%s1802_s0 + $0x33] sm:$0x1]  }
  0x11   :  { %s1255_s10 = smov 102   ;;  %v997_v40 = vld [vmem:[%s1802_s0 + $0x7c] sm:$0x1]   ;;  %s1257_s16 = smov 100   ;;  %v998_v41 = vld [vmem:[%s1802_s0 + $0x45] sm:$0x1]  }
  0x12   :  { %v999_v42 = vld [vmem:[%s1802_s0 + $0xe] sm:$0x1]   ;;  %s1259_s22 = smov 98   ;;  %v1000_v43 = vld [vmem:[%s1802_s0 + $0x57] sm:$0x1]   ;;  %s1261_s28 = smov 96  }
  0x13   :  { %v1001_v44 = vld [vmem:[%s1802_s0 + $0x20] sm:$0x1]   ;;  %v1002_v45 = vld [vmem:[%s1802_s0 + $0x69] sm:$0x1]   ;;  %v1003_v46 = vld [vmem:[%s1802_s0 + $0x32] sm:$0x1]  }
  0x14   :  { %104 = vrot.lane.b32.xlu0 %v978_v20, %s1238_s17  ;;  %110 = vrot.lane.b32.xlu1 %v979_v21, %s1239_s18  ;;  %s1263_s5 = smov 94   ;;  %v1004_v47 = vld [vmem:[%s1802_s0 + $0x7b] sm:$0x1]   ;;  %v1005_v48 = vld [vmem:[%s1802_s0 + $0x44] sm:$0x1]   ;;  %s1265_s11 = smov 92  }
  0x15   :  { %v1006_v49 = vld [vmem:[%s1802_s0 + $0xd] sm:$0x1]   ;;  %v1007_v50 = vld [vmem:[%s1802_s0 + $0x56] sm:$0x1]   ;;  %s1267_s17 = smov 90   ;;  %s1275_s12 = smov 82  }
  0x16   :  { %v1008_v51 = vld [vmem:[%s1802_s0 + $0x1f] sm:$0x1]   ;;  %v1009_v52 = vld [vmem:[%s1802_s0 + $0x68] sm:$0x1]   ;;  %v1010_v53 = vld [vmem:[%s1802_s0 + $0x31] sm:$0x1]  }
  0x17   :  { %v1011_v54 = vld [vmem:[%s1802_s0 + $0x7a] sm:$0x1]   ;;  %v1012_v55 = vld [vmem:[%s1802_s0 + $0x43] sm:$0x1]   ;;  %v1013_v56 = vld [vmem:[%s1802_s0 + $0xc] sm:$0x1]  }
  0x18   :  { %117 = vrot.lane.b32.xlu0 %v980_v22, %s1240_s23  ;;  %124 = vrot.lane.b32.xlu1 %v981_v23, %s1241_s24  ;;  %s1269_s23 = smov 88   ;;  %v1014_v57 = vld [vmem:[%s1802_s0 + $0x55] sm:$0x1]   ;;  %v1015_v58 = vld [vmem:[%s1802_s0 + $0x1e] sm:$0x1]   ;;  %s1277_s18 = smov 80  }
  0x19   :  { %v1016_v59 = vld [vmem:[%s1802_s0 + $0x67] sm:$0x1]   ;;  %v1017_v60 = vld [vmem:[%s1802_s0 + $0x30] sm:$0x1]   ;;  %v1018_v61 = vld [vmem:[%s1802_s0 + $0x79] sm:$0x1]  }
  0x1a   :  { %v1019_v62 = vld [vmem:[%s1802_s0 + $0x42] sm:$0x1]   ;;  %s1279_s24 = smov 78   ;;  %v1020_v63 = vld [vmem:[%s1802_s0 + $0xb] sm:$0x1]   ;;  %s1285_s13 = smov 72  }
  0x1b   :  { %v1021_v0 = vld [vmem:[%s1802_s0 + $0x54] sm:$0x1]   ;;  %v1022_v1 = vld [vmem:[%s1802_s0 + $0x1d] sm:$0x1]   ;;  %v1023_v2 = vld [vmem:[%s1802_s0 + $0x66] sm:$0x1]  }
  0x1c   :  { %131 = vrot.lane.b32.xlu0 %v982_v24, %s1242_s29  ;;  %138 = vrot.lane.b32.xlu1 %v983_v25, %s1243_s30  ;;  %s1271_s29 = smov 86   ;;  %s1281_s30 = smov 76   ;;  %v1024_v3 = vld [vmem:[%s1802_s0 + $0x2f] sm:$0x1]   ;;  %v1025_v4 = vld [vmem:[%s1802_s0 + $0x78] sm:$0x1]  }
  0x1d   :  { %v1026_v5 = vld [vmem:[%s1802_s0 + $0x41] sm:$0x1]   ;;  %v1027_v6 = vld [vmem:[%s1802_s0 + $0xa] sm:$0x1]   ;;  %vm16_vm7 = vcmask 1048568   ;;  %s1287_s19 = smov 70  }
  0x1e   :  { %v1028_v7 = vld [vmem:[%s1802_s0 + $0x53] sm:$0x1]   ;;  %vm43_vm8 = vcmask 1048552   ;;  %v1029_v9 = vld [vmem:[%s1802_s0 + $0x1c] sm:$0x1]   ;;  %vm30_vm9 = vcmask 1048560  }
  0x1f   :  { %s1289_s25 = smov 68   ;;  %v1030_v11 = vld [vmem:[%s1802_s0 + $0x65] sm:$0x1]   ;;  %vm57_vm10 = vcmask 1048544   ;;  %v1031_v13 = vld [vmem:[%s1802_s0 + $0x2e] sm:$0x1]  }
  0x20   :  { %145 = vrot.lane.b32.xlu0 %v984_v26, %s1244_s6  ;;  %152 = vrot.lane.b32.xlu1 %v985_v27, %s1245_s7  ;;  %s1273_s6 = smov 84   ;;  %s1283_s7 = smov 74   ;;  %vm71_vm11 = vcmask 1048536   ;;  %v1032_v15 = vld [vmem:[%s1802_s0 + $0x77] sm:$0x1]   ;;  %vm85_vm12 = vcmask 1048528  }
  0x21   :  { %s1291_s2 = smov 66   ;;  %v1033_v17 = vld [vmem:[%s1802_s0 + $0x40] sm:$0x1]   ;;  %vm92_vm13 = vcmask 1048520   ;;  %s1293_s8 = smov 64   ;;  %vm99_vm14 = vcmask 1040320  }
  0x22   :  { %v1034_v19 = vld [vmem:[%s1802_s0 + $0x9] sm:$0x1]   ;;  %v1035_v21 = vld [vmem:[%s1802_s0 + $0x52] sm:$0x1]   ;;  %vm106_vm15 = vcmask 1032120   ;;  %vm154_vm6 = vcmask 974720  }
  0x23   :  { %v1036_v23 = vld [vmem:[%s1802_s0 + $0x1b] sm:$0x1]   ;;  %v1037_v25 = vld [vmem:[%s1802_s0 + $0x64] sm:$0x1]   ;;  %v1038_v27 = vld [vmem:[%s1802_s0 + $0x2d] sm:$0x1]  }
  0x24   :  { %158 = vrot.lane.b32.xlu0 %v986_v28, %s1246_s14  ;;  %165 = vrot.lane.b32.xlu1 %v987_v29, %s1247_s15  ;;  %s1256_s15 = smov 101   ;;  %s1295_s14 = smov 62   ;;  %v1039_v29 = vld [vmem:[%s1802_s0 + $0x76] sm:$0x1]  }
  0x28   :  { %172 = vrot.lane.b32.xlu0 %v988_v31, %s1248_s20  ;;  %179 = vrot.lane.b32.xlu1 %v989_v32, %s1249_s21  ;;  %s1258_s21 = smov 99   ;;  %s1297_s20 = smov 60   ;;  %v1040_v31 = vld [vmem:[%s1802_s0 + $0x3f] sm:$0x1]  }
  0x2c   :  { %186 = vrot.lane.b32.xlu0 %v990_v33, %s1250_s26  ;;  %193 = vrot.lane.b32.xlu1 %v991_v34, %s1251_s27  ;;  %s1260_s27 = smov 97   ;;  %s1299_s26 = smov 58   ;;  %v1041_v33 = vld [vmem:[%s1802_s0 + $0x8] sm:$0x1]  }
  0x30   :  { %200 = vrot.lane.b32.xlu0 %v992_v35, %s1252_s3  ;;  %206 = vrot.lane.b32.xlu1 %v993_v36, %s1253_s4  ;;  %s1262_s4 = smov 95   ;;  %s1301_s3 = smov 56   ;;  %v1042_v35 = vld [vmem:[%s1802_s0 + $0x51] sm:$0x1]  }
  0x34   :  { %213 = vrot.lane.b32.xlu0 %v994_v37, %s1254_s9  ;;  %220 = vrot.lane.b32.xlu1 %v995_v38, %s1255_s10  ;;  %s1264_s10 = smov 93   ;;  %v1043_v37 = vld [vmem:[%s1802_s0 + $0x1a] sm:$0x1]   ;;  %s1303_s9 = smov 54  }
  0x38   :  { %227 = vrot.lane.b32.xlu0 %v996_v39, %s1256_s15  ;;  %234 = vrot.lane.b32.xlu1 %v997_v40, %s1257_s16  ;;  %s1266_s16 = smov 91   ;;  %v1044_v39 = vld [vmem:[%s1802_s0 + $0x63] sm:$0x1]   ;;  %s1305_s15 = smov 52  }
  0x3c   :  { %241 = vrot.lane.b32.xlu0 %v998_v41, %s1258_s21  ;;  %248 = vrot.lane.b32.xlu1 %v999_v42, %s1259_s22  ;;  %s1268_s22 = smov 89   ;;  %v1045_v41 = vld [vmem:[%s1802_s0 + $0x2c] sm:$0x1]   ;;  %s1307_s21 = smov 50  }
  0x40   :  { %254 = vrot.lane.b32.xlu0 %v1000_v43, %s1260_s27  ;;  %261 = vrot.lane.b32.xlu1 %v1001_v44, %s1261_s28  ;;  %s1270_s28 = smov 87   ;;  %v1046_v43 = vld [vmem:[%s1802_s0 + $0x75] sm:$0x1]   ;;  %s1309_s27 = smov 48  }
  0x44   :  { %268 = vrot.lane.b32.xlu0 %v1002_v45, %s1262_s4  ;;  %275 = vrot.lane.b32.xlu1 %v1003_v46, %s1263_s5  ;;  %s1272_s5 = smov 85   ;;  %v1047_v45 = vld [vmem:[%s1802_s0 + $0x3e] sm:$0x1]   ;;  %s1311_s4 = smov 46  }
  0x48   :  { %282 = vrot.lane.b32.xlu0 %v1004_v47, %s1264_s10  ;;  %289 = vrot.lane.b32.xlu1 %v1005_v48, %s1265_s11  ;;  %s1274_s11 = smov 83   ;;  %v1048_v47 = vld [vmem:[%s1802_s0 + $0x7] sm:$0x1]   ;;  %s1313_s10 = smov 44  }
  0x4c   :  { %296 = vrot.lane.b32.xlu0 %v1006_v49, %s1266_s16  ;;  %302 = vrot.lane.b32.xlu1 %v1007_v50, %s1267_s17  ;;  %s1276_s17 = smov 81   ;;  %v1049_v49 = vld [vmem:[%s1802_s0 + $0x50] sm:$0x1]   ;;  %s1315_s16 = smov 42  }
  0x50   :  { %309 = vrot.lane.b32.xlu0 %v1008_v51, %s1268_s22  ;;  %316 = vrot.lane.b32.xlu1 %v1009_v52, %s1269_s23  ;;  %s1278_s23 = smov 79   ;;  %v1050_v51 = vld [vmem:[%s1802_s0 + $0x19] sm:$0x1]   ;;  %s1317_s22 = smov 40  }
  0x54   :  { %323 = vrot.lane.b32.xlu0 %v1010_v53, %s1270_s28  ;;  %330 = vrot.lane.b32.xlu1 %v1011_v54, %s1271_s29  ;;  %s1280_s29 = smov 77   ;;  %v1051_v53 = vld [vmem:[%s1802_s0 + $0x62] sm:$0x1]   ;;  %s1319_s28 = smov 38  }
  0x58   :  { %337 = vrot.lane.b32.xlu0 %v1012_v55, %s1272_s5  ;;  %344 = vrot.lane.b32.xlu1 %v1013_v56, %s1273_s6  ;;  %s1282_s6 = smov 75   ;;  %v1052_v55 = vld [vmem:[%s1802_s0 + $0x2b] sm:$0x1]   ;;  %s1321_s5 = smov 36  }
  0x5c   :  { %350 = vrot.lane.b32.xlu0 %v1014_v57, %s1274_s11  ;;  %357 = vrot.lane.b32.xlu1 %v1015_v58, %s1275_s12  ;;  %s1284_s12 = smov 73   ;;  %v1053_v57 = vld [vmem:[%s1802_s0 + $0x74] sm:$0x1]   ;;  %s1323_s11 = smov 34  }
  0x60   :  { %364 = vrot.lane.b32.xlu0 %v1016_v59, %s1276_s17  ;;  %371 = vrot.lane.b32.xlu1 %v1017_v60, %s1277_s18  ;;  %s1286_s18 = smov 71   ;;  %v1054_v59 = vld [vmem:[%s1802_s0 + $0x3d] sm:$0x1]   ;;  %s1325_s17 = smov 32  }
  0x64   :  { %378 = vrot.lane.b32.xlu0 %v1018_v61, %s1278_s23  ;;  %385 = vrot.lane.b32.xlu1 %v1019_v62, %s1279_s24  ;;  %s1288_s24 = smov 69   ;;  %v1055_v61 = vld [vmem:[%s1802_s0 + $0x6] sm:$0x1]   ;;  %s1327_s23 = smov 30  }
  0x68   :  { %392 = vrot.lane.b32.xlu0 %v1020_v63, %s1280_s29  ;;  %398 = vrot.lane.b32.xlu1 %v1021_v0, %s1281_s30  ;;  %s1290_s30 = smov 67   ;;  %v1056_v63 = vld [vmem:[%s1802_s0 + $0x4f] sm:$0x1]   ;;  %s1329_s29 = smov 28  }
  0x6c   :  { %405 = vrot.lane.b32.xlu0 %v1022_v1, %s1282_s6  ;;  %412 = vrot.lane.b32.xlu1 %v1023_v2, %s1283_s7  ;;  %s1292_s7 = smov 65   ;;  %v1057_v1 = vld [vmem:[%s1802_s0 + $0x18] sm:$0x1]   ;;  %s1331_s6 = smov 26  }
  0x70   :  { %419 = vrot.lane.b32.xlu0 %v1024_v3, %s1284_s12  ;;  %426 = vrot.lane.b32.xlu1 %v1025_v4, %s1285_s13  ;;  %s1294_s13 = smov 63   ;;  %v1058_v3 = vld [vmem:[%s1802_s0 + $0x61] sm:$0x1]   ;;  %s1333_s12 = smov 24  }
  0x74   :  { %433 = vrot.lane.b32.xlu0 %v1026_v5, %s1286_s18  ;;  %440 = vrot.lane.b32.xlu1 %v1027_v6, %s1287_s19  ;;  %s1296_s19 = smov 61   ;;  %v1059_v5 = vld [vmem:[%s1802_s0 + $0x2a] sm:$0x1]   ;;  %s1335_s18 = smov 22  }
  0x76   :  { %v12_v8 = vpop.permute.xlu0 %11   ;;  %v39_v10 = vpop.permute.xlu1 %38  }
  0x77   :  { %15 = vst.msk [vmem:[#allocation0 + $0x20] sm:$0x1] %vm13_vm5, %v12_v8   ;;  %vm147_vm5 = vcmask 982920  }
  0x78   :  { %18 = vst.msk [vmem:[#allocation0 + $0x18] sm:$0x1] %vm16_vm7, %v12_v8   ;;  %446 = vrot.lane.b32.xlu0 %v1028_v7, %s1288_s24  ;;  %453 = vrot.lane.b32.xlu1 %v1029_v9, %s1289_s25  ;;  %s1298_s25 = smov 59   ;;  %vm160_vm7 = vcmask 966520   ;;  %v1060_v7 = vld [vmem:[%s1802_s0 + $0x73] sm:$0x1]  }
  0x79   :  { %42 = vst.msk [vmem:[#allocation0 + $0x28] sm:$0x1] %vm40_vm3, %v39_v10   ;;  %vm133_vm3 = vcmask 999320   ;;  %v1061_v9 = vld [vmem:[%s1802_s0 + $0x3c] sm:$0x1]   ;;  %s1337_s24 = smov 20  }
  0x7a   :  { %45 = vst.msk [vmem:[#allocation0 + $0x20] sm:$0x1] %vm43_vm8, %v39_v10   ;;  %v26_v12 = vpop.permute.xlu0 %25   ;;  %v53_v14 = vpop.permute.xlu1 %52   ;;  %vm167_vm8 = vcmask 958320  }
  0x7b   :  { %29 = vst.msk [vmem:[#allocation0 + $0x8] sm:$0x1] %vm27_vm4, %v26_v12   ;;  %vm140_vm4 = vcmask 991120  }
  0x7c   :  { %31 = vst.msk [vmem:[#allocation0] sm:$0x1] %vm30_vm9, %v26_v12   ;;  %460 = vrot.lane.b32.xlu0 %v1030_v11, %s1290_s30  ;;  %467 = vrot.lane.b32.xlu1 %v1031_v13, %s1291_s2  ;;  %s1300_s2 = smov 57   ;;  %vm174_vm9 = vcmask 950120   ;;  %v1062_v11 = vld [vmem:[%s1802_s0 + $0x5] sm:$0x1]  }
  0x7d   :  { %56 = vst.msk [vmem:[#allocation0 + $0x10] sm:$0x1] %vm36_vm1, %v53_v14   ;;  %vm119_vm1 = vcmask 1015720   ;;  %v1063_v13 = vld [vmem:[%s1802_s0 + $0x4e] sm:$0x1]   ;;  %s1339_s30 = smov 18  }
  0x7e   :  { %59 = vst.msk [vmem:[#allocation0 + $0x8] sm:$0x1] %vm57_vm10, %v53_v14   ;;  %v67_v16 = vpop.permute.xlu0 %66   ;;  %v81_v18 = vpop.permute.xlu1 %80   ;;  %vm181_vm10 = vcmask 941920  }
  0x7f   :  { %70 = vst.msk [vmem:[#allocation0 + $0x30] sm:$0x1] %vm23_vm2, %v67_v16   ;;  %vm126_vm2 = vcmask 1007520  }
  0x80   :  { %73 = vst.msk [vmem:[#allocation0 + $0x28] sm:$0x1] %vm71_vm11, %v67_v16   ;;  %474 = vrot.lane.b32.xlu0 %v1032_v15, %s1292_s7  ;;  %481 = vrot.lane.b32.xlu1 %v1033_v17, %s1293_s8  ;;  %s1302_s8 = smov 55   ;;  %vm188_vm11 = vcmask 933720   ;;  %v1064_v15 = vld [vmem:[%s1802_s0 + $0x17] sm:$0x1]  }
  0x81   :  { %84 = vst.msk [vmem:[#allocation0 + $0x18] sm:$0x1] %vm9_vm0, %v81_v18   ;;  %vm112_vm0 = vcmask 1023920   ;;  %v1065_v17 = vld [vmem:[%s1802_s0 + $0x60] sm:$0x1]   ;;  %s1341_s7 = smov 16  }
  0x82   :  { %87 = vst.msk [vmem:[#allocation0 + $0x10] sm:$0x1] %vm85_vm12, %v81_v18   ;;  %v91_v20 = vpop.permute.xlu0 %90   ;;  %v98_v22 = vpop.permute.xlu1 %97   ;;  %vm195_vm12 = vcmask 925520  }
  0x83   :  { %94 = vst.msk [vmem:[#allocation0 + $0x30] sm:$0x1] %vm92_vm13, %v91_v20   ;;  %vm202_vm13 = vcmask 917320  }
  0x84   :  { %488 = vrot.lane.b32.xlu0 %v1034_v19, %s1294_s13  ;;  %101 = vst.msk [vmem:[#allocation0 + $0x18] sm:$0x1] %vm99_vm14, %v98_v22   ;;  %494 = vrot.lane.b32.xlu1 %v1035_v21, %s1295_s14  ;;  %s1304_s14 = smov 53   ;;  %vm208_vm14 = vcmask 909120   ;;  %v1066_v19 = vld [vmem:[%s1802_s0 + $0x29] sm:$0x1]  }
  0x85   :  { %v1067_v21 = vld [vmem:[%s1802_s0 + $0x72] sm:$0x1]   ;;  %s1343_s13 = smov 14  }
  0x86   :  { %v105_v24 = vpop.permute.xlu0 %104   ;;  %v111_v26 = vpop.permute.xlu1 %110  }
  0x87   :  { %107 = vst.msk [vmem:[#allocation0] sm:$0x1] %vm106_vm15, %v105_v24   ;;  %vm215_vm15 = vcmask 900920  }
  0x88   :  { %501 = vrot.lane.b32.xlu0 %v1036_v23, %s1296_s19  ;;  %114 = vst.msk [vmem:[#allocation0 + $0x20] sm:$0x1] %vm112_vm0, %v111_v26   ;;  %508 = vrot.lane.b32.xlu1 %v1037_v25, %s1297_s20  ;;  %s1306_s20 = smov 51   ;;  %vm222_vm0 = vcmask 892720   ;;  %v1068_v23 = vld [vmem:[%s1802_s0 + $0x3b] sm:$0x1]  }
  0x89   :  { %v1069_v25 = vld [vmem:[%s1802_s0 + $0x4] sm:$0x1]   ;;  %s1345_s19 = smov 12  }
  0x8a   :  { %v118_v28 = vpop.permute.xlu0 %117   ;;  %v125_v30 = vpop.permute.xlu1 %124  }
  0x8b   :  { %121 = vst.msk [vmem:[#allocation0 + $0x8] sm:$0x1] %vm119_vm1, %v118_v28   ;;  %vm229_vm1 = vcmask 884520  }
  0x8c   :  { %515 = vrot.lane.b32.xlu0 %v1038_v27, %s1298_s25  ;;  %128 = vst.msk [vmem:[#allocation0 + $0x28] sm:$0x1] %vm126_vm2, %v125_v30   ;;  %522 = vrot.lane.b32.xlu1 %v1039_v29, %s1299_s26  ;;  %s1308_s26 = smov 49   ;;  %vm236_vm2 = vcmask 876320   ;;  %v1070_v27 = vld [vmem:[%s1802_s0 + $0x4d] sm:$0x1]  }
  0x8d   :  { %v1071_v29 = vld [vmem:[%s1802_s0 + $0x16] sm:$0x1]   ;;  %s1347_s25 = smov 10  }
  0x8e   :  { %v132_v32 = vpop.permute.xlu0 %131   ;;  %v139_v34 = vpop.permute.xlu1 %138  }
  0x8f   :  { %135 = vst.msk [vmem:[#allocation0 + $0x10] sm:$0x1] %vm133_vm3, %v132_v32   ;;  %vm243_vm3 = vcmask 868120  }
  0x90   :  { %529 = vrot.lane.b32.xlu0 %v1040_v31, %s1300_s2  ;;  %142 = vst.msk [vmem:[#allocation0 + $0x30] sm:$0x1] %vm140_vm4, %v139_v34   ;;  %536 = vrot.lane.b32.xlu1 %v1041_v33, %s1301_s3  ;;  %s1310_s3 = smov 47   ;;  %vm250_vm4 = vcmask 859920   ;;  %v1072_v31 = vld [vmem:[%s1802_s0 + $0x5f] sm:$0x1]  }
  0x91   :  { %v1073_v33 = vld [vmem:[%s1802_s0 + $0x28] sm:$0x1]   ;;  %s1349_s2 = smov 8  }
  0x92   :  { %v146_v36 = vpop.permute.xlu0 %145   ;;  %v153_v38 = vpop.permute.xlu1 %152  }
  0x93   :  { %149 = vst.msk [vmem:[#allocation0 + $0x18] sm:$0x1] %vm147_vm5, %v146_v36   ;;  %vm256_vm5 = vcmask 851720  }
  0x94   :  { %542 = vrot.lane.b32.xlu0 %v1042_v35, %s1302_s8  ;;  %155 = vst.msk [vmem:[#allocation0] sm:$0x1] %vm154_vm6, %v153_v38   ;;  %549 = vrot.lane.b32.xlu1 %v1043_v37, %s1303_s9  ;;  %s1312_s9 = smov 45   ;;  %vm263_vm6 = vcmask 843520   ;;  %v1074_v35 = vld [vmem:[%s1802_s0 + $0x71] sm:$0x1]  }
  0x95   :  { %v1075_v37 = vld [vmem:[%s1802_s0 + $0x3a] sm:$0x1]   ;;  %s1351_s8 = smov 6  }
  0x96   :  { %v159_v40 = vpop.permute.xlu0 %158   ;;  %v166_v42 = vpop.permute.xlu1 %165  }
  0x97   :  { %162 = vst.msk [vmem:[#allocation0 + $0x20] sm:$0x1] %vm160_vm7, %v159_v40   ;;  %vm270_vm7 = vcmask 835320  }
  0x98   :  { %556 = vrot.lane.b32.xlu0 %v1044_v39, %s1304_s14  ;;  %169 = vst.msk [vmem:[#allocation0 + $0x8] sm:$0x1] %vm167_vm8, %v166_v42   ;;  %563 = vrot.lane.b32.xlu1 %v1045_v41, %s1305_s15  ;;  %s1314_s15 = smov 43   ;;  %vm277_vm8 = vcmask 827120   ;;  %v1076_v39 = vld [vmem:[%s1802_s0 + $0x3] sm:$0x1]  }
  0x99   :  { %v1077_v41 = vld [vmem:[%s1802_s0 + $0x4c] sm:$0x1]   ;;  %s1353_s14 = smov 4  }
  0x9a   :  { %v173_v44 = vpop.permute.xlu0 %172   ;;  %v180_v46 = vpop.permute.xlu1 %179  }
  0x9b   :  { %176 = vst.msk [vmem:[#allocation0 + $0x28] sm:$0x1] %vm174_vm9, %v173_v44   ;;  %vm284_vm9 = vcmask 818920  }
  0x9c   :  { %570 = vrot.lane.b32.xlu0 %v1046_v43, %s1306_s20  ;;  %183 = vst.msk [vmem:[#allocation0 + $0x10] sm:$0x1] %vm181_vm10, %v180_v46   ;;  %577 = vrot.lane.b32.xlu1 %v1047_v45, %s1307_s21  ;;  %s1316_s21 = smov 41   ;;  %vm291_vm10 = vcmask 810720   ;;  %v1078_v43 = vld [vmem:[%s1802_s0 + $0x15] sm:$0x1]  }
  0x9d   :  { %v1079_v45 = vld [vmem:[%s1802_s0 + $0x5e] sm:$0x1]   ;;  %s1355_s20 = smov 2  }
  0x9e   :  { %v187_v48 = vpop.permute.xlu0 %186   ;;  %v194_v50 = vpop.permute.xlu1 %193  }
  0x9f   :  { %190 = vst.msk [vmem:[#allocation0 + $0x30] sm:$0x1] %vm188_vm11, %v187_v48   ;;  %vm298_vm11 = vcmask 802520  }
  0xa0   :  { %584 = vrot.lane.b32.xlu0 %v1048_v47, %s1308_s26  ;;  %197 = vst.msk [vmem:[#allocation0 + $0x18] sm:$0x1] %vm195_vm12, %v194_v50   ;;  %590 = vrot.lane.b32.xlu1 %v1049_v49, %s1309_s27  ;;  %s1318_s27 = smov 39   ;;  %vm304_vm12 = vcmask 794320   ;;  %v1080_v47 = vld [vmem:[%s1802_s0 + $0x27] sm:$0x1]  }
  0xa1   :  { %v1081_v49 = vld [vmem:[%s1802_s0 + $0x70] sm:$0x1]  }
  0xa2   :  { %v201_v52 = vpop.permute.xlu0 %200   ;;  %v207_v54 = vpop.permute.xlu1 %206  }
  0xa3   :  { %203 = vst.msk [vmem:[#allocation0] sm:$0x1] %vm202_vm13, %v201_v52   ;;  %vm311_vm13 = vcmask 786120  }
  0xa4   :  { %597 = vrot.lane.b32.xlu0 %v1050_v51, %s1310_s3  ;;  %210 = vst.msk [vmem:[#allocation0 + $0x20] sm:$0x1] %vm208_vm14, %v207_v54   ;;  %604 = vrot.lane.b32.xlu1 %v1051_v53, %s1311_s4  ;;  %s1320_s4 = smov 37   ;;  %vm318_vm14 = vcmask 777920   ;;  %v1082_v51 = vld [vmem:[%s1802_s0 + $0x39] sm:$0x1]  }
  0xa5   :  { %v1083_v53 = vld [vmem:[%s1802_s0 + $0x2] sm:$0x1]  }
  0xa6   :  { %v214_v56 = vpop.permute.xlu0 %213   ;;  %v221_v58 = vpop.permute.xlu1 %220  }
  0xa7   :  { %217 = vst.msk [vmem:[#allocation0 + $0x8] sm:$0x1] %vm215_vm15, %v214_v56   ;;  %vm325_vm15 = vcmask 769720  }
  0xa8   :  { %611 = vrot.lane.b32.xlu0 %v1052_v55, %s1312_s9  ;;  %224 = vst.msk [vmem:[#allocation0 + $0x28] sm:$0x1] %vm222_vm0, %v221_v58   ;;  %618 = vrot.lane.b32.xlu1 %v1053_v57, %s1313_s10  ;;  %s1322_s10 = smov 35   ;;  %vm332_vm0 = vcmask 761520   ;;  %v1084_v55 = vld [vmem:[%s1802_s0 + $0x4b] sm:$0x1]  }
  0xa9   :  { %v1085_v57 = vld [vmem:[%s1802_s0 + $0x14] sm:$0x1]  }
  0xaa   :  { %v228_v60 = vpop.permute.xlu0 %227   ;;  %v235_v62 = vpop.permute.xlu1 %234  }
  0xab   :  { %231 = vst.msk [vmem:[#allocation0 + $0x10] sm:$0x1] %vm229_vm1, %v228_v60   ;;  %vm339_vm1 = vcmask 753320  }
  0xac   :  { %625 = vrot.lane.b32.xlu0 %v1054_v59, %s1314_s15  ;;  %238 = vst.msk [vmem:[#allocation0 + $0x30] sm:$0x1] %vm236_vm2, %v235_v62   ;;  %632 = vrot.lane.b32.xlu1 %v1055_v61, %s1315_s16  ;;  %s1324_s16 = smov 33   ;;  %vm346_vm2 = vcmask 745120   ;;  %v1086_v59 = vld [vmem:[%s1802_s0 + $0x5d] sm:$0x1]  }
  0xad   :  { %v1087_v61 = vld [vmem:[%s1802_s0 + $0x26] sm:$0x1]  }
  0xae   :  { %v242_v0 = vpop.permute.xlu0 %241   ;;  %v249_v2 = vpop.permute.xlu1 %248  }
  0xaf   :  { %245 = vst.msk [vmem:[#allocation0 + $0x18] sm:$0x1] %vm243_vm3, %v242_v0   ;;  %vm352_vm3 = vcmask 736920  }
  0xb0   :  { %638 = vrot.lane.b32.xlu0 %v1056_v63, %s1316_s21  ;;  %251 = vst.msk [vmem:[#allocation0] sm:$0x1] %vm250_vm4, %v249_v2   ;;  %645 = vrot.lane.b32.xlu1 %v1057_v1, %s1317_s22  ;;  %s1326_s22 = smov 31   ;;  %vm359_vm4 = vcmask 728720   ;;  %v1088_v63 = vld [vmem:[%s1802_s0 + $0x6f] sm:$0x1]  }
  0xb1   :  { %v1089_v1 = vld [vmem:[%s1802_s0 + $0x38] sm:$0x1]  }
  0xb2   :  { %v255_v4 = vpop.permute.xlu0 %254   ;;  %v262_v6 = vpop.permute.xlu1 %261  }
  0xb3   :  { %258 = vst.msk [vmem:[#allocation0 + $0x20] sm:$0x1] %vm256_vm5, %v255_v4   ;;  %vm366_vm5 = vcmask 720520  }
  0xb4   :  { %652 = vrot.lane.b32.xlu0 %v1058_v3, %s1318_s27  ;;  %265 = vst.msk [vmem:[#allocation0 + $0x8] sm:$0x1] %vm263_vm6, %v262_v6   ;;  %659 = vrot.lane.b32.xlu1 %v1059_v5, %s1319_s28  ;;  %s1328_s28 = smov 29   ;;  %vm373_vm6 = vcmask 712320   ;;  %v1090_v3 = vld [vmem:[%s1802_s0 + $0x1] sm:$0x1]  }
  0xb5   :  { %v1091_v5 = vld [vmem:[%s1802_s0 + $0x4a] sm:$0x1]  }
  0xb6   :  { %v269_v8 = vpop.permute.xlu0 %268   ;;  %v276_v10 = vpop.permute.xlu1 %275  }
  0xb7   :  { %272 = vst.msk [vmem:[#allocation0 + $0x28] sm:$0x1] %vm270_vm7, %v269_v8   ;;  %vm380_vm7 = vcmask 704120  }
  0xb8   :  { %666 = vrot.lane.b32.xlu0 %v1060_v7, %s1320_s4  ;;  %279 = vst.msk [vmem:[#allocation0 + $0x10] sm:$0x1] %vm277_vm8, %v276_v10   ;;  %673 = vrot.lane.b32.xlu1 %v1061_v9, %s1321_s5  ;;  %s1330_s5 = smov 27   ;;  %vm387_vm8 = vcmask 695920   ;;  %v1092_v7 = vld [vmem:[%s1802_s0 + $0x13] sm:$0x1]  }
  0xb9   :  { %v1093_v9 = vld [vmem:[%s1802_s0 + $0x5c] sm:$0x1]  }
  0xba   :  { %v283_v12 = vpop.permute.xlu0 %282   ;;  %v290_v14 = vpop.permute.xlu1 %289  }
  0xbb   :  { %286 = vst.msk [vmem:[#allocation0 + $0x30] sm:$0x1] %vm284_vm9, %v283_v12   ;;  %vm394_vm9 = vcmask 687720  }
  0xbc   :  { %680 = vrot.lane.b32.xlu0 %v1062_v11, %s1322_s10  ;;  %293 = vst.msk [vmem:[#allocation0 + $0x18] sm:$0x1] %vm291_vm10, %v290_v14   ;;  %686 = vrot.lane.b32.xlu1 %v1063_v13, %s1323_s11  ;;  %s1332_s11 = smov 25   ;;  %vm400_vm10 = vcmask 679520   ;;  %v1094_v11 = vld [vmem:[%s1802_s0 + $0x25] sm:$0x1]  }
  0xbd   :  { %v1095_v13 = vld [vmem:[%s1802_s0 + $0x6e] sm:$0x1]  }
  0xbe   :  { %v297_v16 = vpop.permute.xlu0 %296   ;;  %v303_v18 = vpop.permute.xlu1 %302  }
  0xbf   :  { %299 = vst.msk [vmem:[#allocation0] sm:$0x1] %vm298_vm11, %v297_v16   ;;  %vm407_vm11 = vcmask 671320  }
  0xc0   :  { %693 = vrot.lane.b32.xlu0 %v1064_v15, %s1324_s16  ;;  %306 = vst.msk [vmem:[#allocation0 + $0x20] sm:$0x1] %vm304_vm12, %v303_v18   ;;  %700 = vrot.lane.b32.xlu1 %v1065_v17, %s1325_s17  ;;  %s1334_s17 = smov 23   ;;  %vm414_vm12 = vcmask 663120   ;;  %v1096_v15 = vld [vmem:[%s1802_s0 + $0x37] sm:$0x1]  }
  0xc1   :  { %s1356_s0 = smov 1  }
  0xc2   :  { %v310_v20 = vpop.permute.xlu0 %309   ;;  %v317_v22 = vpop.permute.xlu1 %316  }
  0xc3   :  { %313 = vst.msk [vmem:[#allocation0 + $0x8] sm:$0x1] %vm311_vm13, %v310_v20   ;;  %vm421_vm13 = vcmask 654920  }
  0xc4   :  { %707 = vrot.lane.b32.xlu0 %v1066_v19, %s1326_s22  ;;  %320 = vst.msk [vmem:[#allocation0 + $0x28] sm:$0x1] %vm318_vm14, %v317_v22   ;;  %714 = vrot.lane.b32.xlu1 %v1067_v21, %s1327_s23  ;;  %s1336_s23 = smov 21   ;;  %vm428_vm14 = vcmask 646720  }
  0xc6   :  { %v324_v24 = vpop.permute.xlu0 %323   ;;  %v331_v26 = vpop.permute.xlu1 %330  }
  0xc7   :  { %327 = vst.msk [vmem:[#allocation0 + $0x10] sm:$0x1] %vm325_vm15, %v324_v24   ;;  %vm435_vm15 = vcmask 638520  }
  0xc8   :  { %721 = vrot.lane.b32.xlu0 %v1068_v23, %s1328_s28  ;;  %334 = vst.msk [vmem:[#allocation0 + $0x30] sm:$0x1] %vm332_vm0, %v331_v26   ;;  %728 = vrot.lane.b32.xlu1 %v1069_v25, %s1329_s29  ;;  %s1338_s29 = smov 19   ;;  %vm442_vm0 = vcmask 630320  }
  0xca   :  { %v338_v28 = vpop.permute.xlu0 %337   ;;  %v345_v30 = vpop.permute.xlu1 %344  }
  0xcb   :  { %341 = vst.msk [vmem:[#allocation0 + $0x18] sm:$0x1] %vm339_vm1, %v338_v28   ;;  %vm448_vm1 = vcmask 622120  }
  0xcc   :  { %734 = vrot.lane.b32.xlu0 %v1070_v27, %s1330_s5  ;;  %347 = vst.msk [vmem:[#allocation0] sm:$0x1] %vm346_vm2, %v345_v30   ;;  %741 = vrot.lane.b32.xlu1 %v1071_v29, %s1331_s6  ;;  %s1340_s6 = smov 17   ;;  %vm455_vm2 = vcmask 613920  }
  0xce   :  { %v351_v32 = vpop.permute.xlu0 %350   ;;  %v358_v34 = vpop.permute.xlu1 %357  }
  0xcf   :  { %354 = vst.msk [vmem:[#allocation0 + $0x20] sm:$0x1] %vm352_vm3, %v351_v32   ;;  %vm462_vm3 = vcmask 605720  }
  0xd0   :  { %748 = vrot.lane.b32.xlu0 %v1072_v31, %s1332_s11  ;;  %361 = vst.msk [vmem:[#allocation0 + $0x8] sm:$0x1] %vm359_vm4, %v358_v34   ;;  %755 = vrot.lane.b32.xlu1 %v1073_v33, %s1333_s12  ;;  %s1342_s12 = smov 15   ;;  %vm469_vm4 = vcmask 597520  }
  0xd2   :  { %v365_v36 = vpop.permute.xlu0 %364   ;;  %v372_v38 = vpop.permute.xlu1 %371  }
  0xd3   :  { %368 = vst.msk [vmem:[#allocation0 + $0x28] sm:$0x1] %vm366_vm5, %v365_v36   ;;  %vm476_vm5 = vcmask 589320  }
  0xd4   :  { %762 = vrot.lane.b32.xlu0 %v1074_v35, %s1334_s17  ;;  %375 = vst.msk [vmem:[#allocation0 + $0x10] sm:$0x1] %vm373_vm6, %v372_v38   ;;  %769 = vrot.lane.b32.xlu1 %v1075_v37, %s1335_s18  ;;  %s1344_s18 = smov 13   ;;  %vm483_vm6 = vcmask 581120  }
  0xd6   :  { %v379_v40 = vpop.permute.xlu0 %378   ;;  %v386_v42 = vpop.permute.xlu1 %385  }
  0xd7   :  { %382 = vst.msk [vmem:[#allocation0 + $0x30] sm:$0x1] %vm380_vm7, %v379_v40   ;;  %vm490_vm7 = vcmask 572920  }
  0xd8   :  { %776 = vrot.lane.b32.xlu0 %v1076_v39, %s1336_s23  ;;  %389 = vst.msk [vmem:[#allocation0 + $0x18] sm:$0x1] %vm387_vm8, %v386_v42   ;;  %782 = vrot.lane.b32.xlu1 %v1077_v41, %s1337_s24  ;;  %s1346_s24 = smov 11   ;;  %vm496_vm8 = vcmask 564720  }
  0xda   :  { %v393_v44 = vpop.permute.xlu0 %392   ;;  %v399_v46 = vpop.permute.xlu1 %398  }
  0xdb   :  { %395 = vst.msk [vmem:[#allocation0] sm:$0x1] %vm394_vm9, %v393_v44   ;;  %vm503_vm9 = vcmask 556520  }
  0xdc   :  { %789 = vrot.lane.b32.xlu0 %v1078_v43, %s1338_s29  ;;  %402 = vst.msk [vmem:[#allocation0 + $0x20] sm:$0x1] %vm400_vm10, %v399_v46   ;;  %796 = vrot.lane.b32.xlu1 %v1079_v45, %s1339_s30  ;;  %s1348_s30 = smov 9   ;;  %vm510_vm10 = vcmask 548320  }
  0xde   :  { %v406_v48 = vpop.permute.xlu0 %405   ;;  %v413_v50 = vpop.permute.xlu1 %412  }
  0xdf   :  { %409 = vst.msk [vmem:[#allocation0 + $0x8] sm:$0x1] %vm407_vm11, %v406_v48   ;;  %vm517_vm11 = vcmask 540120  }
  0xe0   :  { %803 = vrot.lane.b32.xlu0 %v1080_v47, %s1340_s6  ;;  %416 = vst.msk [vmem:[#allocation0 + $0x28] sm:$0x1] %vm414_vm12, %v413_v50   ;;  %810 = vrot.lane.b32.xlu1 %v1081_v49, %s1341_s7  ;;  %s1350_s7 = smov 7   ;;  %vm524_vm12 = vcmask 531920  }
  0xe2   :  { %v420_v52 = vpop.permute.xlu0 %419   ;;  %v427_v54 = vpop.permute.xlu1 %426  }
  0xe3   :  { %423 = vst.msk [vmem:[#allocation0 + $0x10] sm:$0x1] %vm421_vm13, %v420_v52   ;;  %vm531_vm13 = vcmask 523720  }
  0xe4   :  { %817 = vrot.lane.b32.xlu0 %v1082_v51, %s1342_s12  ;;  %430 = vst.msk [vmem:[#allocation0 + $0x30] sm:$0x1] %vm428_vm14, %v427_v54   ;;  %824 = vrot.lane.b32.xlu1 %v1083_v53, %s1343_s13  ;;  %s1352_s13 = smov 5   ;;  %vm538_vm14 = vcmask 515520  }
  0xe6   :  { %v434_v56 = vpop.permute.xlu0 %433   ;;  %v441_v58 = vpop.permute.xlu1 %440  }
  0xe7   :  { %437 = vst.msk [vmem:[#allocation0 + $0x18] sm:$0x1] %vm435_vm15, %v434_v56   ;;  %vm544_vm15 = vcmask 507320  }
  0xe8   :  { %830 = vrot.lane.b32.xlu0 %v1084_v55, %s1344_s18  ;;  %443 = vst.msk [vmem:[#allocation0] sm:$0x1] %vm442_vm0, %v441_v58   ;;  %837 = vrot.lane.b32.xlu1 %v1085_v57, %s1345_s19  ;;  %s1354_s19 = smov 3   ;;  %vm551_vm0 = vcmask 499120  }
  0xea   :  { %v447_v60 = vpop.permute.xlu0 %446   ;;  %v454_v62 = vpop.permute.xlu1 %453  }
  0xeb   :  { %450 = vst.msk [vmem:[#allocation0 + $0x20] sm:$0x1] %vm448_vm1, %v447_v60   ;;  %vm558_vm1 = vcmask 490920  }
  0xec   :  { %844 = vrot.lane.b32.xlu0 %v1086_v59, %s1346_s24  ;;  %457 = vst.msk [vmem:[#allocation0 + $0x8] sm:$0x1] %vm455_vm2, %v454_v62   ;;  %851 = vrot.lane.b32.xlu1 %v1087_v61, %s1347_s25  ;;  %vm565_vm2 = vcmask 482720  }
  0xee   :  { %v461_v0 = vpop.permute.xlu0 %460   ;;  %v468_v2 = vpop.permute.xlu1 %467  }
  0xef   :  { %464 = vst.msk [vmem:[#allocation0 + $0x28] sm:$0x1] %vm462_vm3, %v461_v0   ;;  %vm572_vm3 = vcmask 474520  }
  0xf0   :  { %858 = vrot.lane.b32.xlu0 %v1088_v63, %s1348_s30  ;;  %471 = vst.msk [vmem:[#allocation0 + $0x10] sm:$0x1] %vm469_vm4, %v468_v2   ;;  %865 = vrot.lane.b32.xlu1 %v1089_v1, %s1349_s2  ;;  %vm579_vm4 = vcmask 466320  }
  0xf2   :  { %v475_v4 = vpop.permute.xlu0 %474   ;;  %v482_v6 = vpop.permute.xlu1 %481  }
  0xf3   :  { %478 = vst.msk [vmem:[#allocation0 + $0x30] sm:$0x1] %vm476_vm5, %v475_v4   ;;  %vm586_vm5 = vcmask 458120  }
  0xf4   :  { %872 = vrot.lane.b32.xlu0 %v1090_v3, %s1350_s7  ;;  %485 = vst.msk [vmem:[#allocation0 + $0x18] sm:$0x1] %vm483_vm6, %v482_v6   ;;  %878 = vrot.lane.b32.xlu1 %v1091_v5, %s1351_s8  ;;  %vm592_vm6 = vcmask 449920  }
  0xf6   :  { %v489_v8 = vpop.permute.xlu0 %488   ;;  %v495_v10 = vpop.permute.xlu1 %494  }
  0xf7   :  { %491 = vst.msk [vmem:[#allocation0] sm:$0x1] %vm490_vm7, %v489_v8   ;;  %vm599_vm7 = vcmask 441720  }
  0xf8   :  { %885 = vrot.lane.b32.xlu0 %v1092_v7, %s1352_s13  ;;  %498 = vst.msk [vmem:[#allocation0 + $0x20] sm:$0x1] %vm496_vm8, %v495_v10   ;;  %892 = vrot.lane.b32.xlu1 %v1093_v9, %s1353_s14  ;;  %vm606_vm8 = vcmask 433520  }
  0xfa   :  { %v502_v12 = vpop.permute.xlu0 %501   ;;  %v509_v14 = vpop.permute.xlu1 %508  }
  0xfb   :  { %505 = vst.msk [vmem:[#allocation0 + $0x8] sm:$0x1] %vm503_vm9, %v502_v12   ;;  %vm613_vm9 = vcmask 425320  }
  0xfc   :  { %899 = vrot.lane.b32.xlu0 %v1094_v11, %s1354_s19  ;;  %512 = vst.msk [vmem:[#allocation0 + $0x28] sm:$0x1] %vm510_vm10, %v509_v14   ;;  %906 = vrot.lane.b32.xlu1 %v1095_v13, %s1355_s20  ;;  %vm620_vm10 = vcmask 417120  }
  0xfe   :  { %v516_v16 = vpop.permute.xlu0 %515   ;;  %v523_v17 = vpop.permute.xlu1 %522  }
  0xff   :  { %519 = vst.msk [vmem:[#allocation0 + $0x10] sm:$0x1] %vm517_vm11, %v516_v16   ;;  %vm627_vm11 = vcmask 408920  }
 0x100   :  { %913 = vrot.lane.b32.xlu0 %v1096_v15, %s1356_s0  ;;  %526 = vst.msk [vmem:[#allocation0 + $0x30] sm:$0x1] %vm524_vm12, %v523_v17   ;;  %vm634_vm12 = vcmask 400720  }
 0x102   :  { %v530_v18 = vpop.permute.xlu0 %529   ;;  %v537_v19 = vpop.permute.xlu1 %536  }
 0x103   :  { %533 = vst.msk [vmem:[#allocation0 + $0x18] sm:$0x1] %vm531_vm13, %v530_v18   ;;  %vm640_vm13 = vcmask 392520  }
 0x104   :  { %539 = vst.msk [vmem:[#allocation0] sm:$0x1] %vm538_vm14, %v537_v19   ;;  %vm647_vm14 = vcmask 384320  }
 0x106   :  { %v543_v20 = vpop.permute.xlu0 %542   ;;  %v550_v21 = vpop.permute.xlu1 %549  }
 0x107   :  { %546 = vst.msk [vmem:[#allocation0 + $0x20] sm:$0x1] %vm544_vm15, %v543_v20   ;;  %vm654_vm15 = vcmask 376120  }
 0x108   :  { %553 = vst.msk [vmem:[#allocation0 + $0x8] sm:$0x1] %vm551_vm0, %v550_v21   ;;  %vm661_vm0 = vcmask 367920  }
 0x10a   :  { %v557_v22 = vpop.permute.xlu0 %556   ;;  %v564_v23 = vpop.permute.xlu1 %563  }
 0x10b   :  { %560 = vst.msk [vmem:[#allocation0 + $0x28] sm:$0x1] %vm558_vm1, %v557_v22   ;;  %vm668_vm1 = vcmask 359720  }
 0x10c   :  { %567 = vst.msk [vmem:[#allocation0 + $0x10] sm:$0x1] %vm565_vm2, %v564_v23   ;;  %vm675_vm2 = vcmask 351520  }
 0x10e   :  { %v571_v24 = vpop.permute.xlu0 %570   ;;  %v578_v25 = vpop.permute.xlu1 %577  }
 0x10f   :  { %574 = vst.msk [vmem:[#allocation0 + $0x30] sm:$0x1] %vm572_vm3, %v571_v24   ;;  %vm682_vm3 = vcmask 343320  }
 0x110   :  { %581 = vst.msk [vmem:[#allocation0 + $0x18] sm:$0x1] %vm579_vm4, %v578_v25   ;;  %vm688_vm4 = vcmask 335120  }
 0x112   :  { %v585_v26 = vpop.permute.xlu0 %584   ;;  %v591_v27 = vpop.permute.xlu1 %590  }
 0x113   :  { %587 = vst.msk [vmem:[#allocation0] sm:$0x1] %vm586_vm5, %v585_v26   ;;  %vm695_vm5 = vcmask 326920  }
 0x114   :  { %594 = vst.msk [vmem:[#allocation0 + $0x20] sm:$0x1] %vm592_vm6, %v591_v27   ;;  %vm702_vm6 = vcmask 318720  }
 0x116   :  { %v598_v28 = vpop.permute.xlu0 %597   ;;  %v605_v29 = vpop.permute.xlu1 %604  }
 0x117   :  { %601 = vst.msk [vmem:[#allocation0 + $0x8] sm:$0x1] %vm599_vm7, %v598_v28   ;;  %vm709_vm7 = vcmask 310520  }
 0x118   :  { %608 = vst.msk [vmem:[#allocation0 + $0x28] sm:$0x1] %vm606_vm8, %v605_v29   ;;  %vm716_vm8 = vcmask 302320  }
 0x11a   :  { %v612_v30 = vpop.permute.xlu0 %611   ;;  %v619_v31 = vpop.permute.xlu1 %618  }
 0x11b   :  { %615 = vst.msk [vmem:[#allocation0 + $0x10] sm:$0x1] %vm613_vm9, %v612_v30   ;;  %vm723_vm9 = vcmask 294120  }
 0x11c   :  { %622 = vst.msk [vmem:[#allocation0 + $0x30] sm:$0x1] %vm620_vm10, %v619_v31   ;;  %vm730_vm10 = vcmask 285920  }
 0x11e   :  { %v626_v32 = vpop.permute.xlu0 %625   ;;  %v633_v33 = vpop.permute.xlu1 %632  }
 0x11f   :  { %629 = vst.msk [vmem:[#allocation0 + $0x18] sm:$0x1] %vm627_vm11, %v626_v32   ;;  %vm736_vm11 = vcmask 277720  }
 0x120   :  { %635 = vst.msk [vmem:[#allocation0] sm:$0x1] %vm634_vm12, %v633_v33   ;;  %vm743_vm12 = vcmask 269520  }
 0x122   :  { %v639_v34 = vpop.permute.xlu0 %638   ;;  %v646_v35 = vpop.permute.xlu1 %645  }
 0x123   :  { %642 = vst.msk [vmem:[#allocation0 + $0x20] sm:$0x1] %vm640_vm13, %v639_v34   ;;  %vm750_vm13 = vcmask 261320  }
 0x124   :  { %649 = vst.msk [vmem:[#allocation0 + $0x8] sm:$0x1] %vm647_vm14, %v646_v35   ;;  %vm757_vm14 = vcmask 253120  }
 0x126   :  { %v653_v36 = vpop.permute.xlu0 %652   ;;  %v660_v37 = vpop.permute.xlu1 %659  }
 0x127   :  { %656 = vst.msk [vmem:[#allocation0 + $0x28] sm:$0x1] %vm654_vm15, %v653_v36   ;;  %vm764_vm15 = vcmask 244920  }
 0x128   :  { %663 = vst.msk [vmem:[#allocation0 + $0x10] sm:$0x1] %vm661_vm0, %v660_v37   ;;  %vm771_vm0 = vcmask 236720  }
 0x12a   :  { %v667_v38 = vpop.permute.xlu0 %666   ;;  %v674_v39 = vpop.permute.xlu1 %673  }
 0x12b   :  { %670 = vst.msk [vmem:[#allocation0 + $0x30] sm:$0x1] %vm668_vm1, %v667_v38   ;;  %vm778_vm1 = vcmask 228520  }
 0x12c   :  { %677 = vst.msk [vmem:[#allocation0 + $0x18] sm:$0x1] %vm675_vm2, %v674_v39   ;;  %vm784_vm2 = vcmask 220320  }
 0x12e   :  { %v681_v40 = vpop.permute.xlu0 %680   ;;  %v687_v41 = vpop.permute.xlu1 %686  }
 0x12f   :  { %683 = vst.msk [vmem:[#allocation0] sm:$0x1] %vm682_vm3, %v681_v40   ;;  %vm791_vm3 = vcmask 212120  }
 0x130   :  { %690 = vst.msk [vmem:[#allocation0 + $0x20] sm:$0x1] %vm688_vm4, %v687_v41   ;;  %vm798_vm4 = vcmask 203920  }
 0x132   :  { %v694_v42 = vpop.permute.xlu0 %693   ;;  %v701_v43 = vpop.permute.xlu1 %700  }
 0x133   :  { %697 = vst.msk [vmem:[#allocation0 + $0x8] sm:$0x1] %vm695_vm5, %v694_v42   ;;  %vm805_vm5 = vcmask 195720  }
 0x134   :  { %704 = vst.msk [vmem:[#allocation0 + $0x28] sm:$0x1] %vm702_vm6, %v701_v43   ;;  %vm812_vm6 = vcmask 187520  }
 0x136   :  { %v708_v44 = vpop.permute.xlu0 %707   ;;  %v715_v45 = vpop.permute.xlu1 %714  }
 0x137   :  { %711 = vst.msk [vmem:[#allocation0 + $0x10] sm:$0x1] %vm709_vm7, %v708_v44   ;;  %vm819_vm7 = vcmask 179320  }
 0x138   :  { %718 = vst.msk [vmem:[#allocation0 + $0x30] sm:$0x1] %vm716_vm8, %v715_v45   ;;  %vm826_vm8 = vcmask 171120  }
 0x13a   :  { %v722_v46 = vpop.permute.xlu0 %721   ;;  %v729_v47 = vpop.permute.xlu1 %728  }
 0x13b   :  { %725 = vst.msk [vmem:[#allocation0 + $0x18] sm:$0x1] %vm723_vm9, %v722_v46   ;;  %vm832_vm9 = vcmask 162920  }
 0x13c   :  { %731 = vst.msk [vmem:[#allocation0] sm:$0x1] %vm730_vm10, %v729_v47   ;;  %vm839_vm10 = vcmask 154720  }
 0x13e   :  { %v735_v48 = vpop.permute.xlu0 %734   ;;  %v742_v49 = vpop.permute.xlu1 %741  }
 0x13f   :  { %738 = vst.msk [vmem:[#allocation0 + $0x20] sm:$0x1] %vm736_vm11, %v735_v48   ;;  %vm846_vm11 = vcmask 146520  }
 0x140   :  { %745 = vst.msk [vmem:[#allocation0 + $0x8] sm:$0x1] %vm743_vm12, %v742_v49   ;;  %vm853_vm12 = vcmask 138320  }
 0x142   :  { %v749_v50 = vpop.permute.xlu0 %748   ;;  %v756_v51 = vpop.permute.xlu1 %755  }
 0x143   :  { %752 = vst.msk [vmem:[#allocation0 + $0x28] sm:$0x1] %vm750_vm13, %v749_v50   ;;  %vm860_vm13 = vcmask 130120  }
 0x144   :  { %759 = vst.msk [vmem:[#allocation0 + $0x10] sm:$0x1] %vm757_vm14, %v756_v51   ;;  %vm867_vm14 = vcmask 121920  }
 0x146   :  { %v763_v52 = vpop.permute.xlu0 %762   ;;  %v770_v53 = vpop.permute.xlu1 %769  }
 0x147   :  { %766 = vst.msk [vmem:[#allocation0 + $0x30] sm:$0x1] %vm764_vm15, %v763_v52   ;;  %vm874_vm15 = vcmask 113720  }
 0x148   :  { %773 = vst.msk [vmem:[#allocation0 + $0x18] sm:$0x1] %vm771_vm0, %v770_v53   ;;  %vm880_vm0 = vcmask 105520  }
 0x14a   :  { %v777_v54 = vpop.permute.xlu0 %776   ;;  %v783_v55 = vpop.permute.xlu1 %782  }
 0x14b   :  { %779 = vst.msk [vmem:[#allocation0] sm:$0x1] %vm778_vm1, %v777_v54   ;;  %vm887_vm1 = vcmask 97320  }
 0x14c   :  { %786 = vst.msk [vmem:[#allocation0 + $0x20] sm:$0x1] %vm784_vm2, %v783_v55   ;;  %vm894_vm2 = vcmask 89120  }
 0x14e   :  { %v790_v56 = vpop.permute.xlu0 %789   ;;  %v797_v57 = vpop.permute.xlu1 %796  }
 0x14f   :  { %793 = vst.msk [vmem:[#allocation0 + $0x8] sm:$0x1] %vm791_vm3, %v790_v56   ;;  %vm901_vm3 = vcmask 80920  }
 0x150   :  { %800 = vst.msk [vmem:[#allocation0 + $0x28] sm:$0x1] %vm798_vm4, %v797_v57   ;;  %vm908_vm4 = vcmask 72720  }
 0x152   :  { %v804_v58 = vpop.permute.xlu0 %803   ;;  %v811_v59 = vpop.permute.xlu1 %810  }
 0x153   :  { %807 = vst.msk [vmem:[#allocation0 + $0x10] sm:$0x1] %vm805_vm5, %v804_v58   ;;  %vm915_vm5 = vcmask 64520  }
 0x154   :  { %814 = vst.msk [vmem:[#allocation0 + $0x30] sm:$0x1] %vm812_vm6, %v811_v59  }
 0x156   :  { %v818_v60 = vpop.permute.xlu0 %817   ;;  %v825_v61 = vpop.permute.xlu1 %824  }
 0x157   :  { %821 = vst.msk [vmem:[#allocation0 + $0x18] sm:$0x1] %vm819_vm7, %v818_v60  }
 0x158   :  { %827 = vst.msk [vmem:[#allocation0] sm:$0x1] %vm826_vm8, %v825_v61  }
 0x15a   :  { %v831_v62 = vpop.permute.xlu0 %830   ;;  %v838_v63 = vpop.permute.xlu1 %837  }
 0x15b   :  { %834 = vst.msk [vmem:[#allocation0 + $0x20] sm:$0x1] %vm832_vm9, %v831_v62  }
 0x15c   :  { %841 = vst.msk [vmem:[#allocation0 + $0x8] sm:$0x1] %vm839_vm10, %v838_v63  }
 0x15e   :  { %v845_v0 = vpop.permute.xlu0 %844   ;;  %v852_v1 = vpop.permute.xlu1 %851  }
 0x15f   :  { %848 = vst.msk [vmem:[#allocation0 + $0x28] sm:$0x1] %vm846_vm11, %v845_v0  }
 0x160   :  { %855 = vst.msk [vmem:[#allocation0 + $0x10] sm:$0x1] %vm853_vm12, %v852_v1  }
 0x162   :  { %v859_v2 = vpop.permute.xlu0 %858   ;;  %v866_v3 = vpop.permute.xlu1 %865  }
 0x163   :  { %862 = vst.msk [vmem:[#allocation0 + $0x30] sm:$0x1] %vm860_vm13, %v859_v2  }
 0x164   :  { %869 = vst.msk [vmem:[#allocation0 + $0x18] sm:$0x1] %vm867_vm14, %v866_v3  }
 0x166   :  { %v873_v4 = vpop.permute.xlu0 %872   ;;  %v879_v5 = vpop.permute.xlu1 %878  }
 0x167   :  { %875 = vst.msk [vmem:[#allocation0] sm:$0x1] %vm874_vm15, %v873_v4  }
 0x168   :  { %882 = vst.msk [vmem:[#allocation0 + $0x20] sm:$0x1] %vm880_vm0, %v879_v5  }
 0x16a   :  { %v886_v6 = vpop.permute.xlu0 %885   ;;  %v893_v7 = vpop.permute.xlu1 %892  }
 0x16b   :  { %889 = vst.msk [vmem:[#allocation0 + $0x8] sm:$0x1] %vm887_vm1, %v886_v6  }
 0x16c   :  { %896 = vst.msk [vmem:[#allocation0 + $0x28] sm:$0x1] %vm894_vm2, %v893_v7  }
 0x16e   :  { %v921_v8 = vld [vmem:[#allocation0] sm:$0x1]  ;;  %v900_v9 = vpop.permute.xlu0 %899   ;;  %v907_v11 = vpop.permute.xlu1 %906  }
 0x16f   :  { %923 = vst [vmem:[%s1803_s1] sm:$0x1] %v921_v8  ;;  %v942_v10 = vld [vmem:[#allocation0 + $0x20] sm:$0x1]  ;;  %903 = vst.msk [vmem:[#allocation0 + $0x10] sm:$0x1] %vm901_vm3, %v900_v9  }
 0x170   :  { %1100 = vst [vmem:[%s1803_s1 + $0x4] sm:$0x1] %v942_v10  ;;  %910 = vst.msk [vmem:[#allocation0 + $0x30] sm:$0x1] %vm908_vm4, %v907_v11  }
 0x172   :  { %v925_v12 = vld [vmem:[#allocation0 + $0x8] sm:$0x1]  ;;  %v914_v13 = vpop.permute.xlu0 %913  }
 0x173   :  { %1097 = vst [vmem:[%s1803_s1 + $0x1] sm:$0x1] %v925_v12  ;;  %v948_v14 = vld [vmem:[#allocation0 + $0x28] sm:$0x1]  ;;  %917 = vst.msk [vmem:[#allocation0 + $0x18] sm:$0x1] %vm915_vm5, %v914_v13  }
 0x174   :  { %1101 = vst [vmem:[%s1803_s1 + $0x5] sm:$0x1] %v948_v14 }
 0x176   :  { %v930_v15 = vld [vmem:[#allocation0 + $0x10] sm:$0x1] }
 0x177   :  { %1098 = vst [vmem:[%s1803_s1 + $0x2] sm:$0x1] %v930_v15  ;;  %v954_v16 = vld [vmem:[#allocation0 + $0x30] sm:$0x1] }
 0x178   :  { %1102 = vst [vmem:[%s1803_s1 + $0x6] sm:$0x1] %v954_v16 }
 0x17a   :  { %v936_v17 = vld [vmem:[#allocation0 + $0x18] sm:$0x1] }
 0x17b   :  { %1099 = vst [vmem:[%s1803_s1 + $0x3] sm:$0x1] %v936_v17 }

// kernel: _weighted_l1_forward.1
= control target key start
LH: loop header
LB: loop body
LE: loop exit
PB: predicated region body
PF: predicated region fallthrough
CT: control target
= control target key end

     0   :  { %s1229_s18 = smov 0   ;;  %s1231_s19 = smov 0   ;;  %s1687_s0 = inlined_call_operand.vmem [shape: f32[8,1792], index: 0, kind: input, shape index: {}]   ;;  %s1688_s1 = inlined_call_operand.vmem [shape: f32[8,1792], index: 1, kind: input, shape index: {}]   ;;  %s1689_s2 = inlined_call_operand.vmem [shape: f32[1,896], index: 2, kind: input, shape index: {}]   ;;  %s1690_s3 = inlined_call_operand.vmem [shape: f32[8,256], index: 3, kind: input, shape index: {}]   ;;  %s1691_s4 = inlined_call_operand.vmem [shape: f32[128,896], index: 4, kind: input, shape index: {}]   ;;  %s1692_s5 = inlined_call_operand.vmem [shape: f32[8,1792], index: 5, kind: output, shape index: {}]  }
   0x1   :  { %s1233_s20 = smov 0  }
   0x2 LB: > { %s24_s21 = sadd.s32 1, %s1190_s19  ;;  %p961_p0 = scmp.ge.s32.totalorder %s1194_s20, 1  ;;  %s1194_s20 = sphi %s1233_s20, %s15_s20   ;;  %s1190_s19 = sphi %s1231_s19, %s1694_s19   ;;  %s1186_s18 = sphi %s1229_s18, %s1693_s18  }
   0x3   : > { %p25_p1 = scmp.ge.s32.totalorder %s24_s21, 2  ;;  %p240_p2 = scmp.lt.s32.totalorder %s1194_s20, 3 }
   0x5   : > { %s1696_s21 = smov (%p25_p1, %s24_s21), 0  ;;  %p241_p3 = pnand %p961_p0, %p240_p2 }
   0x6   : > { %v426_v0 = vld [vmem:[%s1691_s4 + $0x8] sm:$0xff] (!%p241_p3)  ;;  %v433_v1 = vld [vmem:[%s1691_s4 + $0x40] sm:$0xff] (!%p241_p3)  ;;  %v428_v2 = vld [vmem:[%s1691_s4 + $0x18] sm:$0xff] (!%p241_p3)  ;;  %v1196_v7 = vmov (!%p241_p3), 0.0   ;;  %p315_p4 = scmp.lt.s32.totalorder (!%p241_p3), %s1186_s18, 1  ;;  %s966_s27 = sshll.u32 (!%p241_p3), %s1186_s18, 7 }
   0x7   : > { %244 = sbr.rel (%p241_p3) target bundleno = 289 (0x121), region = 40  ;;  %v1025_v3 = vpack.c.bf16 (!%p241_p3), %v433_v1, %v426_v0  ;;  %v435_v4 = vld [vmem:[%s1691_s4 + $0x50] sm:$0xff] (!%p241_p3)  ;;  %v425_v5 = vld [vmem:[%s1691_s4] sm:$0xff] (!%p241_p3)  ;;  %v432_v6 = vld [vmem:[%s1691_s4 + $0x38] sm:$0xff] (!%p241_p3)  ;;  %601 = vmatprep.mubr.f32.mxu0 (!%p241_p3), %v1196_v7  ;;  %672 = vmatprep.mubr.f32.mxu1 (!%p241_p3), %v1196_v7  ;;  %vm1198_vm1 = vmmov (!%p241_p3), 0  }
   0x8   : > { %v1057_v8 = vpack.c.bf16 (!%p241_p3), %v435_v4, %v428_v2  ;;  %v1027_v9 = vpack.c.bf16 (!%p241_p3), %v432_v6, %v425_v5  ;;  %v427_v10 = vld [vmem:[%s1691_s4 + $0x10] sm:$0xff] (!%p241_p3)  ;;  %v434_v11 = vld [vmem:[%s1691_s4 + $0x48] sm:$0xff] (!%p241_p3)  ;;  %v440_v12 = vld [vmem:[%s1691_s4 + $0x78] sm:$0xff] (!%p241_p3)  ;;  %s293_s17 = smul.u32 (!%p241_p3), 7, %s1186_s18 }
   0x9   : > { %1026 = vmatprep.subr.bf16.mxu0 (!%p241_p3), %v1025_v3  ;;  %v1059_v13 = vpack.c.bf16 (!%p241_p3), %v434_v11, %v427_v10  ;;  %v447_v14 = vld [vmem:[%s1691_s4 + $0xb0] sm:$0xff] (!%p241_p3)  ;;  %v442_v15 = vld [vmem:[%s1691_s4 + $0x88] sm:$0xff] (!%p241_p3)  ;;  %v449_v16 = vld [vmem:[%s1691_s4 + $0xc0] sm:$0xff] (!%p241_p3) }
   0xa   : > { %1058 = vmatprep.subr.bf16.mxu1 (!%p241_p3), %v1057_v8  ;;  %1028 = vmatpush1.bf16.msra.mxu0 (!%p241_p3), %v1027_v9  ;;  %v1029_v17 = vpack.c.bf16 (!%p241_p3), %v447_v14, %v440_v12  ;;  %v1061_v18 = vpack.c.bf16 (!%p241_p3), %v449_v16, %v442_v15  ;;  %v439_v19 = vld [vmem:[%s1691_s4 + $0x70] sm:$0xff] (!%p241_p3)  ;;  %v446_v20 = vld [vmem:[%s1691_s4 + $0xa8] sm:$0xff] (!%p241_p3)  ;;  %v441_v21 = vld [vmem:[%s1691_s4 + $0x80] sm:$0xff] (!%p241_p3)  ;;  %p296_p5 = scmp.lt.s32.totalorder (!%p241_p3), %s293_s17, 13 }
   0xb   : > { %1060 = vmatpush1.bf16.msra.mxu1 (!%p241_p3), %v1059_v13  ;;  %v1031_v22 = vpack.c.bf16 (!%p241_p3), %v446_v20, %v439_v19  ;;  %v448_v23 = vld [vmem:[%s1691_s4 + $0xb8] sm:$0xff] (!%p241_p3)  ;;  %v454_v24 = vld [vmem:[%s1691_s4 + $0xe8] sm:$0xff] (!%p241_p3)  ;;  %v461_v25 = vld [vmem:[%s1691_s4 + $0x120] sm:$0xff] (!%p241_p3)  ;;  %v368_v13 = vlaneseq (!%p241_p3) }
   0xc   : > { %1030 = vmatprep.subr.bf16.mxu0 (!%p241_p3), %v1029_v17  ;;  %1062 = vmatprep.subr.bf16.mxu1 (!%p241_p3), %v1061_v18  ;;  %v1063_v26 = vpack.c.bf16 (!%p241_p3), %v448_v23, %v441_v21  ;;  %v1033_v27 = vpack.c.bf16 (!%p241_p3), %v461_v25, %v454_v24  ;;  %v456_v28 = vld [vmem:[%s1691_s4 + $0xf8] sm:$0xff] (!%p241_p3)  ;;  %v463_v29 = vld [vmem:[%s1691_s4 + $0x130] sm:$0xff] (!%p241_p3)  ;;  %v453_v30 = vld [vmem:[%s1691_s4 + $0xe0] sm:$0xff] (!%p241_p3) }
   0xd   : > { %v1065_v31 = vpack.c.bf16 (!%p241_p3), %v463_v29, %v456_v28  ;;  %v460_v32 = vld [vmem:[%s1691_s4 + $0x118] sm:$0xff] (!%p241_p3)  ;;  %v455_v33 = vld [vmem:[%s1691_s4 + $0xf0] sm:$0xff] (!%p241_p3)  ;;  %v462_v34 = vld [vmem:[%s1691_s4 + $0x128] sm:$0xff] (!%p241_p3) }
   0xe   : > { %1032 = vmatpush1.bf16.msra.mxu0 %v1031_v22  ;;  %v1035_v35 = vpack.c.bf16 %v460_v32, %v453_v30  ;;  %v468_v36 = vld [vmem:[%s1691_s4 + $0x158] sm:$0xff]  ;;  %v475_v37 = vld [vmem:[%s1691_s4 + $0x190] sm:$0xff]  ;;  %v470_v38 = vld [vmem:[%s1691_s4 + $0x168] sm:$0xff]  ;;  %v1067_v39 = vpack.c.bf16 %v462_v34, %v455_v33  ;;  %s316_s9 = scalar_select %p315_p4, %s1186_s18, 1  ;;  %v420_v32 = vstv %s966_s27 }
   0xf   : > { %1064 = vmatpush1.bf16.msra.mxu1 %v1063_v26  ;;  %1034 = vmatprep.subr.bf16.mxu0 %v1033_v27  ;;  %v1037_v40 = vpack.c.bf16 %v475_v37, %v468_v36  ;;  %v477_v41 = vld [vmem:[%s1691_s4 + $0x1a0] sm:$0xff]  ;;  %v467_v42 = vld [vmem:[%s1691_s4 + $0x150] sm:$0xff]  ;;  %v474_v43 = vld [vmem:[%s1691_s4 + $0x188] sm:$0xff]  ;;  %v418_v26 = vand.u32 127, %v368_v13  ;;  %s1698_s17 = smov (!%p296_p5, %s293_s17), 13 }
  0x10   : > { %1066 = vmatprep.subr.bf16.mxu1 %v1065_v31  ;;  %v1069_v44 = vpack.c.bf16 %v477_v41, %v470_v38  ;;  %v469_v45 = vld [vmem:[%s1691_s4 + $0x160] sm:$0xff]  ;;  %v476_v46 = vld [vmem:[%s1691_s4 + $0x198] sm:$0xff]  ;;  %v482_v47 = vld [vmem:[%s1691_s4 + $0x1c8] sm:$0xff]  ;;  %v1039_v51 = vpack.c.bf16 %v474_v43, %v467_v42  ;;  %s964_s26 = sshll.u32 %s316_s9, 3  ;;  %s1624_s22 = sshll.u32 %s1698_s17, 3 }
  0x11   : > { %v489_v48 = vld [vmem:[%s1691_s4 + $0x200] sm:$0xff]  ;;  %v484_v49 = vld [vmem:[%s1691_s4 + $0x1d8] sm:$0xff]  ;;  %v491_v50 = vld [vmem:[%s1691_s4 + $0x210] sm:$0xff]  ;;  %v1071_v52 = vpack.c.bf16 %v476_v46, %v469_v45  ;;  %v1455_v38 = vadd.s32 %v420_v32, %v418_v26  ;;  %s320_s8 = scalar_lea.vmem %s1690_s3, %s964_s26  ;;  %s1630_s25 = scalar_lea.vmem %s1688_s1, %s1624_s22 }
  0x12   : > { %1036 = vmatpush1.bf16.msra.mxu0 %v1035_v35  ;;  %v1041_v53 = vpack.c.bf16 %v489_v48, %v482_v47  ;;  %v481_v54 = vld [vmem:[%s1691_s4 + $0x1c0] sm:$0xff]  ;;  %v488_v55 = vld [vmem:[%s1691_s4 + $0x1f8] sm:$0xff]  ;;  %v483_v56 = vld [vmem:[%s1691_s4 + $0x1d0] sm:$0xff]  ;;  %v1073_v57 = vpack.c.bf16 %v491_v50, %v484_v49  ;;  %s1636_s29 = scalar_lea.vmem %s1687_s0, %s1624_s22  ;;  %s1660_s7 = scalar_lea.vmem %s1692_s5, %s1624_s22 }
  0x13   : > { %1068 = vmatpush1.bf16.msra.mxu1 %v1067_v39  ;;  %1038 = vmatprep.subr.bf16.mxu0 %v1037_v40  ;;  %v490_v58 = vld [vmem:[%s1691_s4 + $0x208] sm:$0xff]  ;;  %v496_v59 = vld [vmem:[%s1691_s4 + $0x238] sm:$0xff]  ;;  %v503_v60 = vld [vmem:[%s1691_s4 + $0x270] sm:$0xff]  ;;  %v1043_v63 = vpack.c.bf16 %v488_v55, %v481_v54  ;;  %vm422_vm0 = vcmp.lt.s32.totalorder %v1455_v38, 256  ;;  %v1197_v54 = vmov 0.0|0.0  }
  0x14   : > { %1070 = vmatprep.subr.bf16.mxu1 %v1069_v44  ;;  %v498_v61 = vld [vmem:[%s1691_s4 + $0x248] sm:$0xff]  ;;  %v505_v62 = vld [vmem:[%s1691_s4 + $0x280] sm:$0xff]  ;;  %v1075_v0 = vpack.c.bf16 %v490_v58, %v483_v56  ;;  %v1045_v1 = vpack.c.bf16 %v503_v60, %v496_v59  ;;  %v495_v2 = vld [vmem:[%s1691_s4 + $0x230] sm:$0xff] }
  0x15   : > { %v502_v3 = vld [vmem:[%s1691_s4 + $0x268] sm:$0xff]  ;;  %v497_v4 = vld [vmem:[%s1691_s4 + $0x240] sm:$0xff]  ;;  %v1077_v5 = vpack.c.bf16 %v505_v62, %v498_v61  ;;  %v504_v6 = vld [vmem:[%s1691_s4 + $0x278] sm:$0xff] }
  0x16   : > { %1040 = vmatpush1.bf16.msra.mxu0 %v1039_v51  ;;  %v510_v8 = vld [vmem:[%s1691_s4 + $0x2a8] sm:$0xff]  ;;  %v517_v9 = vld [vmem:[%s1691_s4 + $0x2e0] sm:$0xff]  ;;  %v512_v10 = vld [vmem:[%s1691_s4 + $0x2b8] sm:$0xff]  ;;  %v1047_v12 = vpack.c.bf16 %v502_v3, %v495_v2  ;;  %v1079_v14 = vpack.c.bf16 %v504_v6, %v497_v4 }
  0x17   : > { %1072 = vmatpush1.bf16.msra.mxu1 %v1071_v52  ;;  %1042 = vmatprep.subr.bf16.mxu0 %v1041_v53  ;;  %v519_v11 = vld [vmem:[%s1691_s4 + $0x2f0] sm:$0xff]  ;;  %v1049_v15 = vpack.c.bf16 %v517_v9, %v510_v8  ;;  %v509_v16 = vld [vmem:[%s1691_s4 + $0x2a0] sm:$0xff]  ;;  %v516_v17 = vld [vmem:[%s1691_s4 + $0x2d8] sm:$0xff] }
  0x18   : > { %1074 = vmatprep.subr.bf16.mxu1 %v1073_v57  ;;  %v511_v18 = vld [vmem:[%s1691_s4 + $0x2b0] sm:$0xff]  ;;  %v1081_v19 = vpack.c.bf16 %v519_v11, %v512_v10  ;;  %v518_v20 = vld [vmem:[%s1691_s4 + $0x2e8] sm:$0xff]  ;;  %v524_v21 = vld [vmem:[%s1691_s4 + $0x318] sm:$0xff]  ;;  %v1051_v25 = vpack.c.bf16 %v516_v17, %v509_v16 }
  0x19   : > { %v531_v22 = vld [vmem:[%s1691_s4 + $0x350] sm:$0xff]  ;;  %v526_v23 = vld [vmem:[%s1691_s4 + $0x328] sm:$0xff]  ;;  %v533_v24 = vld [vmem:[%s1691_s4 + $0x360] sm:$0xff]  ;;  %v1083_v27 = vpack.c.bf16 %v518_v20, %v511_v18 }
  0x1a   : > { %1044 = vmatpush1.bf16.msra.mxu0 %v1043_v63  ;;  %v1053_v28 = vpack.c.bf16 %v531_v22, %v524_v21  ;;  %v523_v29 = vld [vmem:[%s1691_s4 + $0x310] sm:$0xff]  ;;  %v530_v30 = vld [vmem:[%s1691_s4 + $0x348] sm:$0xff]  ;;  %v525_v31 = vld [vmem:[%s1691_s4 + $0x320] sm:$0xff]  ;;  %v1085_v33 = vpack.c.bf16 %v533_v24, %v526_v23 }
  0x1b   : > { %1076 = vmatpush1.bf16.msra.mxu1 %v1075_v0  ;;  %1046 = vmatprep.subr.bf16.mxu0 %v1045_v1  ;;  %v532_v34 = vld [vmem:[%s1691_s4 + $0x358] sm:$0xff]  ;;  %v430_v35 = vld [vmem:[%s1691_s4 + $0x28] sm:$0xff]  ;;  %v437_v36 = vld [vmem:[%s1691_s4 + $0x60] sm:$0xff]  ;;  %v1055_v37 = vpack.c.bf16 %v530_v30, %v523_v29 }
  0x1c   : > { %1078 = vmatprep.subr.bf16.mxu1 %v1077_v5  ;;  %v1087_v39 = vpack.c.bf16 %v532_v34, %v525_v31  ;;  %v1089_v40 = vpack.c.bf16 %v437_v36, %v430_v35  ;;  %v429_v41 = vld [vmem:[%s1691_s4 + $0x20] sm:$0xff]  ;;  %v436_v42 = vld [vmem:[%s1691_s4 + $0x58] sm:$0xff]  ;;  %v431_v43 = vld [vmem:[%s1691_s4 + $0x30] sm:$0xff] }
  0x1d   : > { %v438_v44 = vld [vmem:[%s1691_s4 + $0x68] sm:$0xff]  ;;  %v444_v45 = vld [vmem:[%s1691_s4 + $0x98] sm:$0xff]  ;;  %v451_v46 = vld [vmem:[%s1691_s4 + $0xd0] sm:$0xff]  ;;  %v1091_v48 = vpack.c.bf16 %v436_v42, %v429_v41 }
  0x1e   : > { %1048 = vmatpush1.bf16.msra.mxu0 %v1047_v12  ;;  %v1479_v47 = vld [vmem:[%s320_s8] sm:$0xff]  ;;  %v1122_v49 = vpack.c.bf16 %v438_v44, %v431_v43  ;;  %v1093_v50 = vpack.c.bf16 %v451_v46, %v444_v45  ;;  %v443_v51 = vld [vmem:[%s1691_s4 + $0x90] sm:$0xff]  ;;  %v450_v52 = vld [vmem:[%s1691_s4 + $0xc8] sm:$0xff] }
  0x1f   : > { %1080 = vmatpush1.bf16.msra.mxu1 %v1079_v14  ;;  %1050 = vmatprep.subr.bf16.mxu0 %v1049_v15  ;;  %v445_v53 = vld [vmem:[%s1691_s4 + $0xa0] sm:$0xff]  ;;  %v452_v55 = vld [vmem:[%s1691_s4 + $0xd8] sm:$0xff]  ;;  %v458_v56 = vld [vmem:[%s1691_s4 + $0x108] sm:$0xff]  ;;  %v1095_v58 = vpack.c.bf16 %v450_v52, %v443_v51 }
  0x20   : > { %1082 = vmatprep.subr.bf16.mxu1 %v1081_v19  ;;  %v465_v57 = vld [vmem:[%s1691_s4 + $0x140] sm:$0xff]  ;;  %v1125_v59 = vpack.c.bf16 %v452_v55, %v445_v53  ;;  %v464_v62 = vld [vmem:[%s1691_s4 + $0x138] sm:$0xff]  ;;  %v459_v63 = vld [vmem:[%s1691_s4 + $0x110] sm:$0xff] }
  0x21   : > { %v1097_v60 = vpack.c.bf16 %v465_v57, %v458_v56  ;;  %v457_v61 = vld [vmem:[%s1691_s4 + $0x100] sm:$0xff]  ;;  %v466_v0 = vld [vmem:[%s1691_s4 + $0x148] sm:$0xff]  ;;  %v472_v1 = vld [vmem:[%s1691_s4 + $0x178] sm:$0xff] }
  0x22   : > { %1052 = vmatpush1.bf16.msra.mxu0 %v1051_v25  ;;  %v479_v2 = vld [vmem:[%s1691_s4 + $0x1b0] sm:$0xff]  ;;  %v1099_v3 = vpack.c.bf16 %v464_v62, %v457_v61  ;;  %v1128_v4 = vpack.c.bf16 %v466_v0, %v459_v63  ;;  %v478_v8 = vld [vmem:[%s1691_s4 + $0x1a8] sm:$0xff]  ;;  %v473_v9 = vld [vmem:[%s1691_s4 + $0x180] sm:$0xff] }
  0x23   : > { %1084 = vmatpush1.bf16.msra.mxu1 %v1083_v27  ;;  %1054 = vmatprep.subr.bf16.mxu0 %v1053_v28  ;;  %v1101_v5 = vpack.c.bf16 %v479_v2, %v472_v1  ;;  %v471_v6 = vld [vmem:[%s1691_s4 + $0x170] sm:$0xff]  ;;  %v486_v10 = vld [vmem:[%s1691_s4 + $0x1e8] sm:$0xff]  ;;  %v493_v11 = vld [vmem:[%s1691_s4 + $0x220] sm:$0xff] }
  0x24   : > { %1086 = vmatprep.subr.bf16.mxu1 %v1085_v33  ;;  %v1103_v12 = vpack.c.bf16 %v478_v8, %v471_v6  ;;  %v1105_v15 = vpack.c.bf16 %v493_v11, %v486_v10  ;;  %v485_v16 = vld [vmem:[%s1691_s4 + $0x1e0] sm:$0xff]  ;;  %v492_v17 = vld [vmem:[%s1691_s4 + $0x218] sm:$0xff]  ;;  %v487_v18 = vld [vmem:[%s1691_s4 + $0x1f0] sm:$0xff] }
  0x25   : > { %v494_v19 = vld [vmem:[%s1691_s4 + $0x228] sm:$0xff]  ;;  %v500_v20 = vld [vmem:[%s1691_s4 + $0x258] sm:$0xff]  ;;  %v507_v21 = vld [vmem:[%s1691_s4 + $0x290] sm:$0xff]  ;;  %v1107_v22 = vpack.c.bf16 %v492_v17, %v485_v16 }
  0x26   : > { %1056 = vmatpush1.bf16.msra.mxu0 %v1055_v37  ;;  %v1134_v23 = vpack.c.bf16 %v494_v19, %v487_v18  ;;  %v1109_v24 = vpack.c.bf16 %v507_v21, %v500_v20  ;;  %v499_v25 = vld [vmem:[%s1691_s4 + $0x250] sm:$0xff]  ;;  %v506_v26 = vld [vmem:[%s1691_s4 + $0x288] sm:$0xff]  ;;  %v501_v27 = vld [vmem:[%s1691_s4 + $0x260] sm:$0xff] }
  0x27   : > { %1088 = vmatpush1.bf16.msra.mxu1 %v1087_v39  ;;  %1090 = vmatprep.subr.bf16.mxu0 %v1089_v40  ;;  %v508_v28 = vld [vmem:[%s1691_s4 + $0x298] sm:$0xff]  ;;  %v514_v29 = vld [vmem:[%s1691_s4 + $0x2c8] sm:$0xff]  ;;  %v521_v30 = vld [vmem:[%s1691_s4 + $0x300] sm:$0xff]  ;;  %v1111_v31 = vpack.c.bf16 %v506_v26, %v499_v25 }
  0x28   : > { %1121 = vmatprep.subr.bf16.mxu1 %v1197_v54  ;;  %v1137_v32 = vpack.c.bf16 %v508_v28, %v501_v27  ;;  %v1113_v33 = vpack.c.bf16 %v521_v30, %v514_v29  ;;  %v513_v34 = vld [vmem:[%s1691_s4 + $0x2c0] sm:$0xff]  ;;  %v520_v35 = vld [vmem:[%s1691_s4 + $0x2f8] sm:$0xff]  ;;  %v515_v36 = vld [vmem:[%s1691_s4 + $0x2d0] sm:$0xff] }
  0x29   : > { %967 = vmatmul.mubr.msk.f32.vlgmr.msra.gmra.mrb[0].mxu0 %vm422_vm0, %v1479_v47  ;;  %v522_v37 = vld [vmem:[%s1691_s4 + $0x308] sm:$0xff]  ;;  %v528_v39 = vld [vmem:[%s1691_s4 + $0x338] sm:$0xff]  ;;  %v535_v40 = vld [vmem:[%s1691_s4 + $0x370] sm:$0xff]  ;;  %v1115_v41 = vpack.c.bf16 %v520_v35, %v513_v34 }
  0x2a   : > { %968 = vmatmul.mubr.msk.f32.vlgmr.msra.gmra.mrb[0].mxu1 %vm422_vm0, %v1479_v47  ;;  %1092 = vmatpush1.bf16.msra.mxu0 %v1091_v48  ;;  %v1140_v42 = vpack.c.bf16 %v522_v37, %v515_v36  ;;  %v1117_v43 = vpack.c.bf16 %v535_v40, %v528_v39  ;;  %v527_v44 = vld [vmem:[%s1691_s4 + $0x330] sm:$0xff]  ;;  %v534_v45 = vld [vmem:[%s1691_s4 + $0x368] sm:$0xff]  ;;  %v529_v46 = vld [vmem:[%s1691_s4 + $0x340] sm:$0xff] }
  0x2b   : > { %1123 = vmatpush3.bf16.msra.mxu1 %v1122_v49  ;;  %1094 = vmatprep.subr.bf16.mxu0 %v1093_v50  ;;  %v536_v48 = vld [vmem:[%s1691_s4 + $0x378] sm:$0xff]  ;;  %v1119_v49 = vpack.c.bf16 %v534_v45, %v527_v44  ;;  %v338_v38 = vld [vmem:[%s1630_s25] sm:$0xff]  ;;  %v339_v51 = vld [vmem:[%s1630_s25 + $0x8] sm:$0xff] }
  0x2c   : > { %1124 = vmatprep.subr.bf16.mxu1 %v1197_v54  ;;  %743 = vmatprep.mubr.f32.mxu0 %v1196_v7  ;;  %v1143_v50 = vpack.c.bf16 %v536_v48, %v529_v46  ;;  %v340_v52 = vld [vmem:[%s1630_s25 + $0x10] sm:$0xff]  ;;  %v341_v53 = vld [vmem:[%s1630_s25 + $0x18] sm:$0xff]  ;;  %vm345_vm2 = vcmp.ne.f32.partialorder %v338_v38, %v338_v38  ;;  %v332_v55 = vld [vmem:[%s1636_s29 + $0x8] sm:$0xff]  ;;  %vm346_vm3 = vcmp.ne.f32.partialorder %v339_v51, %v339_v51 }
  0x2d   : > { %1022 = vmatprep.mubr.msk.f32.mxu1 %vm1198_vm1, %v1196_v7  ;;  %v480_v7 = vld [vmem:[%s1691_s4 + $0x1b8] sm:$0xff]  ;;  %v333_v56 = vld [vmem:[%s1636_s29 + $0x10] sm:$0xff]  ;;  %vm347_vm4 = vcmp.ne.f32.partialorder %v340_v52, %v340_v52  ;;  %vm348_vm5 = vcmp.ne.f32.partialorder %v341_v53, %v341_v53  ;;  %v353_v62 = vsel %vm346_vm3, %v332_v55, %v339_v51  ;;  %v342_v27 = vld [vmem:[%s1630_s25 + $0x20] sm:$0xff] }
  0x2e   : > { %1096 = vmatpush1.bf16.msra.mxu0 %v1095_v58  ;;  %v1131_v14 = vpack.c.bf16 %v480_v7, %v473_v9  ;;  %v334_v58 = vld [vmem:[%s1636_s29 + $0x18] sm:$0xff]  ;;  %v354_v63 = vsel %vm347_vm4, %v333_v56, %v340_v52  ;;  %v344_v28 = vld [vmem:[%s1630_s25 + $0x30] sm:$0xff]  ;;  %v343_v29 = vld [vmem:[%s1630_s25 + $0x28] sm:$0xff]  ;;  %vm349_vm6 = vcmp.ne.f32.partialorder %v342_v27, %v342_v27 }
  0x2f   : > { %1126 = vmatpush3.bf16.msra.mxu1 %v1125_v59  ;;  %1098 = vmatprep.subr.bf16.mxu0 %v1097_v60  ;;  %v366_v60 = vld [vmem:[%s1689_s2] sm:$0xff]  ;;  %v355_v1 = vsel %vm348_vm5, %v334_v58, %v341_v53  ;;  %v361_v6 = vsub.f32 %v333_v56, %v354_v63  ;;  %vm351_vm7 = vcmp.ne.f32.partialorder %v344_v28, %v344_v28 }
  0x30   : > { %1127 = vmatprep.subr.bf16.mxu1 %v1197_v54  ;;  %v362_v9 = vsub.f32 %v334_v58, %v355_v1  ;;  %v335_v30 = vld [vmem:[%s1636_s29 + $0x20] sm:$0xff]  ;;  %vm350_vm8 = vcmp.ne.f32.partialorder %v343_v29, %v343_v29 }
  0x31   : > { %v356_v34 = vsel %vm349_vm6, %v335_v30, %v342_v27 }
  0x32   : > { %1100 = vmatpush1.bf16.msra.mxu0 %v1099_v3  ;;  %v363_v40 = vsub.f32 %v335_v30, %v356_v34 }
  0x33   : > { %1129 = vmatpush3.bf16.msra.mxu1 %v1128_v4  ;;  %1102 = vmatprep.subr.bf16.mxu0 %v1101_v5  ;;  %v360_v4 = vsub.f32 %v332_v55, %v353_v62 }
  0x34   : > { %1130 = vmatprep.subr.bf16.mxu1 %v1197_v54 }
  0x36   : > { %1104 = vmatpush1.bf16.msra.mxu0 %v1103_v12 }
  0x37   : > { %1132 = vmatpush3.bf16.msra.mxu1 %v1131_v14  ;;  %1106 = vmatprep.subr.bf16.mxu0 %v1105_v15 }
  0x38   : > { %1133 = vmatprep.subr.bf16.mxu1 %v1197_v54 }
  0x3a   : > { %1108 = vmatpush1.bf16.msra.mxu0 %v1107_v22 }
  0x3b   : > { %1135 = vmatpush3.bf16.msra.mxu1 %v1134_v23  ;;  %1110 = vmatprep.subr.bf16.mxu0 %v1109_v24 }
  0x3c   : > { %1136 = vmatprep.subr.bf16.mxu1 %v1197_v54 }
  0x3e   : > { %1112 = vmatpush1.bf16.msra.mxu0 %v1111_v31  ;;  %v337_v31 = vld [vmem:[%s1636_s29 + $0x30] sm:$0xff] }
  0x3f   : > { %1138 = vmatpush3.bf16.msra.mxu1 %v1137_v32  ;;  %1114 = vmatprep.subr.bf16.mxu0 %v1113_v33  ;;  %v336_v32 = vld [vmem:[%s1636_s29 + $0x28] sm:$0xff]  ;;  %v358_v37 = vsel %vm351_vm7, %v337_v31, %v344_v28 }
  0x40   : > { %1139 = vmatprep.subr.bf16.mxu1 %v1197_v54  ;;  %v357_v39 = vsel %vm350_vm8, %v336_v32, %v343_v29 }
  0x41   : > { %v364_v44 = vsub.f32 %v336_v32, %v357_v39 }
  0x42   : > { %1116 = vmatpush1.bf16.msra.mxu0 %v1115_v41 }
  0x43   : > { %1141 = vmatpush3.bf16.msra.mxu1 %v1140_v42  ;;  %1118 = vmatprep.subr.bf16.mxu0 %v1117_v43  ;;  %v365_v42 = vsub.f32 %v337_v31, %v358_v37 }
  0x44   : > { %1142 = vmatprep.subr.bf16.mxu1 %v1197_v54  ;;  %v331_v54 = vld [vmem:[%s1636_s29] sm:$0xff] }
  0x45   : > { %v352_v59 = vsel %vm345_vm2, %v331_v54, %v338_v38 }
  0x46   : > { %1120 = vmatpush1.bf16.msra.mxu0 %v1119_v49  ;;  %v359_v2 = vsub.f32 %v331_v54, %v352_v59 }
  0x47   : > { %1144 = vmatpush3.bf16.msra.mxu1 %v1143_v50 }
  0x49   : > { %969 = vmatmul.mubr.msk.f32.vlgmr.msra.gmra.mrb[2].mxu0 %vm422_vm0, %v1479_v47 }
  0x4a   : > { %1023 = vmatmul.mubr.msk.f32.vlgmr.msra.gmra.mrb[2].mxu1 %vm422_vm0, %v1479_v47  ;;  %v1640_v47 = vshrl.u32 %v368_v13, 7 }
  0x4c   : > { %v370_v57 = vsub.s32 0, %v1640_v47  ;;  %v374_v13 = vsub.s32 1, %v1640_v47  ;;  %v378_v61 = vsub.s32 2, %v1640_v47  ;;  %v382_v0 = vsub.s32 3, %v1640_v47 }
  0x4d   : > { %v386_v33 = vsub.s32 4, %v1640_v47  ;;  %v394_v35 = vsub.s32 6, %v1640_v47  ;;  %v390_v36 = vsub.s32 5, %v1640_v47 }
  0x4e   : > { %v371_v3 = vrot.slane %v366_v60, %v370_v57  ;;  %v375_v5 = vrot.slane %v366_v60, %v374_v13  ;;  %v379_v8 = vrot.slane %v366_v60, %v378_v61  ;;  %v383_v7 = vrot.slane %v366_v60, %v382_v0 }
  0x4f   : > { %v387_v41 = vrot.slane %v366_v60, %v386_v33  ;;  %v395_v43 = vrot.slane %v366_v60, %v394_v35  ;;  %v391_v45 = vrot.slane %v366_v60, %v390_v36 }
  0x50   : > { %v403_v10 = vmul.f32 %v371_v3, %v359_v2  ;;  %v404_v11 = vmul.f32 %v375_v5, %v360_v4  ;;  %v405_v12 = vmul.f32 %v379_v8, %v361_v6  ;;  %v406_v14 = vmul.f32 %v383_v7, %v362_v9 }
  0x51   : > { %v407_v46 = vmul.f32 %v387_v41, %v363_v40  ;;  %v409_v48 = vmul.f32 %v395_v43, %v365_v42  ;;  %v408_v49 = vmul.f32 %v391_v45, %v364_v44 }
  0x52   : > { %v410_v15 = vand.u32 2147483647, %v403_v10  ;;  %v411_v16 = vand.u32 2147483647, %v404_v11  ;;  %v412_v17 = vand.u32 2147483647, %v405_v12 }
  0x53   : > { %v413_v18 = vand.u32 2147483647, %v406_v14  ;;  %v414_v50 = vand.u32 2147483647, %v407_v46  ;;  %v416_v38 = vand.u32 2147483647, %v409_v48 }
  0x54   : > { %v415_v51 = vand.u32 2147483647, %v408_v49 }
  0xfc   : > { %v603_v19 = vpop.f32.mrb[0].mxu0 }
  0xfd   : > { %v820_v20 = vmul.f32 %v603_v19, %v410_v15  ;;  %v605_v21 = vpop.f32.mrb[1].mxu0  ;;  %v674_v22 = vpop.f32.mrb[0].mxu1 }
  0xfe   : > { %v821_v23 = vmul.f32 %v605_v21, %v411_v16  ;;  %v822_v24 = vmul.f32 %v674_v22, %v412_v17  ;;  %v676_v25 = vpop.f32.mrb[1].mxu1 }
  0xff   : > { %827 = vst [vmem:[%s1660_s7] sm:$0xff] %v820_v20  ;;  %v823_v26 = vmul.f32 %v676_v25, %v413_v18 }
 0x100   : > { %828 = vst [vmem:[%s1660_s7 + $0x8] sm:$0xff] %v821_v23  ;;  %829 = vst [vmem:[%s1660_s7 + $0x10] sm:$0xff] %v822_v24 }
 0x101   : > { %830 = vst [vmem:[%s1660_s7 + $0x18] sm:$0xff] %v823_v26 }
 0x11c   : > { %v745_v52 = vpop.f32.mrb[2].mxu0 }
 0x11d   : > { %v824_v53 = vmul.f32 %v745_v52, %v414_v50  ;;  %v816_v47 = vpop.f32.mrb[2].mxu1  ;;  %v747_v54 = vpop.f32.mrb[3].mxu0 }
 0x11e   : > { %v826_v55 = vmul.f32 %v816_v47, %v416_v38  ;;  %v825_v56 = vmul.f32 %v747_v54, %v415_v51  ;;  %v1024_v57 = vpop.f32.mrb[3].mxu1 }
 0x11f   : > { %831 = vst [vmem:[%s1660_s7 + $0x20] sm:$0xff] %v824_v53 }
 0x120   : > { %833 = vst [vmem:[%s1660_s7 + $0x30] sm:$0xff] %v826_v55  ;;  %832 = vst [vmem:[%s1660_s7 + $0x28] sm:$0xff] %v825_v56 }
 0x121 PF: > { %s15_s20 = sadd.s32 1, %s1194_s20   ;;  %s1693_s18 = smov %s1190_s19 }
 0x122   : > { %p12_p6 = scmp.ge.s32.totalorder %s15_s20, 4   ;;  %s1694_s19 = smov %s1696_s21 }
 0x124   :  { %14 = sbr.rel (!%p12_p6) target bundleno = 2 (0x2), region = 76 }

</bundles_post_ra>
